<compile_context>
chip_gen: v7x
topology: tpu7x:2x2x1
jax: 0.10.0
libtpu: 0.0.40
codegen_flags: <defaults>
</compile_context>

<pallas_src>
import jax
import jax.numpy as jnp
from jax.experimental import pallas as pl
from jax.experimental.pallas import tpu as pltpu


# -----------------------------------------------------------------------------
# Parameter-slab layout helpers
# -----------------------------------------------------------------------------
def _lstm_slab_offsets(C, H, num_layers):
    """Row offsets of each LSTM parameter block inside the (rows, 4H) slab."""
    offs = []
    r = 0
    for li in range(num_layers):
        if li == 0:
            offs.append((r, r + C, r + C + H))     # w_ih rows, w_hh rows, bias row
            r += C + H + 1
        else:
            offs.append((r, r + 2 * H))            # [w_ih; w_hh] rows, bias row
            r += 2 * H + 1
    return offs, r


def pack_params(lstm_params, reg_params):
    """Pre-scale i/f/o gate columns by 0.5 (sigmoid(x)=0.5*tanh(x/2)+0.5) and pack
    all parameters into two contiguous f32 slabs (2 DMAs instead of 13)."""
    H = lstm_params[0][1].shape[0]
    col_scale = jnp.concatenate([
        jnp.full((H,), 0.5, jnp.float32),   # i
        jnp.full((H,), 0.5, jnp.float32),   # f
        jnp.ones((H,), jnp.float32),        # g (stays tanh)
        jnp.full((H,), 0.5, jnp.float32),   # o
    ])[None, :]                             # (1, 4H)

    pieces = []
    for li, (w_ih, w_hh, b) in enumerate(lstm_params):
        if li == 0:
            pieces += [w_ih * col_scale, w_hh * col_scale, b * col_scale]
        else:
            pieces += [jnp.concatenate([w_ih, w_hh], axis=0) * col_scale,
                       b * col_scale]
    slab_lstm = jnp.concatenate(pieces, axis=0)            # (rows, 4H)

    w1, b1, w2, b2, w3, b3 = reg_params
    rw3_blk = jnp.zeros((H, H), jnp.float32).at[:, 0:1].set(w3)   # only col 0 used
    rb3_row = jnp.zeros((1, H), jnp.float32).at[:, 0:1].set(b3)
    slab_reg = jnp.concatenate([w1, w2, rw3_blk, b1, b2, rb3_row], axis=0)  # (T*H+2H+3, H)
    return slab_lstm, slab_reg


# -----------------------------------------------------------------------------
# Fused model kernel
# -----------------------------------------------------------------------------
def _make_fused_kernel(B, T, C, H, num_layers):
    lstm_offs, _ = _lstm_slab_offsets(C, H, num_layers)
    # regressor slab row offsets (slab width = H)
    o_rw1 = 0
    o_rw2 = o_rw1 + T * H
    o_rw3 = o_rw2 + H
    o_rb1 = o_rw3 + H
    o_rb2 = o_rb1 + 1
    o_rb3 = o_rb2 + 1

    def cell(gates, c):
        # i/f/o pre-activations arrive pre-scaled by 0.5, so ONE full-width tanh
        # covers all four gates: sigmoid(x) = 0.5*tanh(x/2) + 0.5.
        th = jnp.tanh(gates)
        i_g = 0.5 * th[:, 0 * H:1 * H] + 0.5
        f_g = 0.5 * th[:, 1 * H:2 * H] + 0.5
        g_g = th[:, 2 * H:3 * H]
        o_g = 0.5 * th[:, 3 * H:4 * H] + 0.5
        c_new = f_g * c + i_g * g_g
        h_new = o_g * jnp.tanh(c_new)
        return h_new, c_new

    def kernel(x_ref, lstm_ref, reg_ref, out_ref):
        f32 = jnp.float32

        # ---- layer-0 params + hoisted input projection (ONE MXU pass, all T steps)
        o_ih0, o_hh0, o_b0 = lstm_offs[0]
        w_ih0 = lstm_ref[o_ih0:o_ih0 + C, :]                     # (C, 4H)
        w_hh0 = lstm_ref[o_hh0:o_hh0 + H, :]                     # (H, 4H)
        b0 = lstm_ref[o_b0:o_b0 + 1, :]                          # (1, 4H)
        xw0 = jnp.dot(x_ref[...], w_ih0,
                      preferred_element_type=f32) + b0           # (T*B, 4H)

        # ---- stacked-layer params: fused [W_ih; W_hh] + bias (loaded once)
        w_stk, b_stk = [], []
        for li in range(1, num_layers):
            o_w, o_b = lstm_offs[li]
            w_stk.append(lstm_ref[o_w:o_w + 2 * H, :])           # (2H, 4H)
            b_stk.append(lstm_ref[o_b:o_b + 1, :])               # (1, 4H)

        h = [jnp.zeros((B, H), f32) for _ in range(num_layers)]
        c = [jnp.zeros((B, H), f32) for _ in range(num_layers)]
        acc = jnp.zeros((B, H), f32)   # regressor layer-1 accumulator

        # Interleaved, fully-unrolled recurrence: layer li step t depends only on
        # layer li-1 step t and layer li step t-1, so layer-0 step t+1 overlaps
        # layer-1 step t (shorter serial chain, two independent MXU/EUP streams).
        # Dropout between LSTM layers is identity at inference.
        for t in range(T):
            gates0 = xw0[t * B:(t + 1) * B, :] + jnp.dot(
                h[0], w_hh0, preferred_element_type=f32)
            h[0], c[0] = cell(gates0, c[0])

            for li in range(1, num_layers):
                hcat = jnp.concatenate([h[li - 1], h[li]], axis=1)     # (B, 2H)
                gates = jnp.dot(hcat, w_stk[li - 1],
                                preferred_element_type=f32) + b_stk[li - 1]
                h[li], c[li] = cell(gates, c[li])

            # ReLU (self.activate) + flatten + regressor layer 1, distributed over t:
            # acc += relu(h_last_t) @ rw1[t*H:(t+1)*H, :]   (off the recurrence chain)
            acc = acc + jnp.dot(jnp.maximum(h[-1], 0.0),
                                reg_ref[o_rw1 + t * H:o_rw1 + (t + 1) * H, :],
                                preferred_element_type=f32)

        # ---- remaining MLP regressor layers ----
        rb1 = reg_ref[o_rb1:o_rb1 + 1, :]
        rb2 = reg_ref[o_rb2:o_rb2 + 1, :]
        rb3 = reg_ref[o_rb3:o_rb3 + 1, :]
        m1 = jnp.maximum(acc + rb1, 0.0)
        m2 = jnp.maximum(jnp.dot(m1, reg_ref[o_rw2:o_rw2 + H, :],
                                 preferred_element_type=f32) + rb2, 0.0)
        logits = jnp.dot(m2, reg_ref[o_rw3:o_rw3 + H, :],
                         preferred_element_type=f32) + rb3       # (B, H); col 0 valid
        out_ref[...] = logits[:, 0:1]

    return kernel


# -----------------------------------------------------------------------------
# Model wrapper: single fused pallas_call
# -----------------------------------------------------------------------------
def lstm_model_forward(x, lstm_params, reg_params):
    # x: (B, T, C) batch-first, float32
    B, T, C = x.shape
    H = lstm_params[0][1].shape[0]
    num_layers = len(lstm_params)

    slab_lstm, slab_reg = pack_params(lstm_params, reg_params)
    # Tiny one-time layout transform: time-major rows t*B+b so each step's
    # precomputed gate rows are a contiguous static slice.
    x2d = jnp.swapaxes(x, 0, 1).reshape(T * B, C)

    y = pl.pallas_call(
        _make_fused_kernel(B, T, C, H, num_layers),
        out_shape=jax.ShapeDtypeStruct((B, 1), jnp.float32),
        in_specs=[pl.BlockSpec(memory_space=pltpu.MemorySpace.VMEM)] * 3,
        out_specs=pl.BlockSpec(memory_space=pltpu.MemorySpace.VMEM),
    )(x2d, slab_lstm, slab_reg)
    return y.reshape(-1)                                          # torch.flatten -> (B,)


# -----------------------------------------------------------------------------
# Pure-JAX reference (correctness check)
# -----------------------------------------------------------------------------
def _lstm_layer_ref(x_bt, w_ih, w_hh, b):
    B = x_bt.shape[0]
    H = w_hh.shape[0]

    def step(carry, x_t):
        h, c = carry
        gates = x_t @ w_ih + h @ w_hh + b
        i_g = jax.nn.sigmoid(gates[:, :H])
        f_g = jax.nn.sigmoid(gates[:, H:2 * H])
        g_g = jnp.tanh(gates[:, 2 * H:3 * H])
        o_g = jax.nn.sigmoid(gates[:, 3 * H:])
        c = f_g * c + i_g * g_g
        h = o_g * jnp.tanh(c)
        return (h, c), h

    init = (jnp.zeros((B, H), jnp.float32), jnp.zeros((B, H), jnp.float32))
    _, ys = jax.lax.scan(step, init, jnp.swapaxes(x_bt, 0, 1))
    return jnp.swapaxes(ys, 0, 1)


def lstm_model_ref(x, lstm_params, reg_params):
    h = x
    for (w_ih, w_hh, b) in lstm_params:
        h = _lstm_layer_ref(h, w_ih, w_hh, b)
    flat = jnp.maximum(h.reshape(h.shape[0], -1), 0.0)
    w1, b1, w2, b2, w3, b3 = reg_params
    h1 = jnp.maximum(flat @ w1 + b1, 0.0)
    h2 = jnp.maximum(h1 @ w2 + b2, 0.0)
    return (h2 @ w3 + b3).reshape(-1)


# -----------------------------------------------------------------------------
# Deterministic parameter construction (PyTorch-style uniform init shapes)
# -----------------------------------------------------------------------------
def init_params(key, layer_num, H, T, C):
    lstm_params = []
    in_dim = C
    k_lstm = 1.0 / jnp.sqrt(H)
    for _ in range(layer_num):
        key, k1, k2, k3, k4 = jax.random.split(key, 5)
        w_ih = jax.random.uniform(k1, (in_dim, 4 * H), jnp.float32, -k_lstm, k_lstm)
        w_hh = jax.random.uniform(k2, (H, 4 * H), jnp.float32, -k_lstm, k_lstm)
        b_ih = jax.random.uniform(k3, (4 * H,), jnp.float32, -k_lstm, k_lstm)
        b_hh = jax.random.uniform(k4, (4 * H,), jnp.float32, -k_lstm, k_lstm)
        lstm_params.append((w_ih, w_hh, (b_ih + b_hh)[None, :]))
        in_dim = H

    def linear(key, fan_in, fan_out):
        k1, k2 = jax.random.split(key)
        bound = 1.0 / jnp.sqrt(fan_in)
        w = jax.random.uniform(k1, (fan_in, fan_out), jnp.float32, -bound, bound)
        b = jax.random.uniform(k2, (1, fan_out), jnp.float32, -bound, bound)
        return w, b

    key, k1, k2, k3 = jax.random.split(key, 4)
    w1, b1 = linear(k1, H * T, H)
    w2, b2 = linear(k2, H, H)
    w3, b3 = linear(k3, H, 1)
    return lstm_params, (w1, b1, w2, b2, w3, b3)


if __name__ == "__main__":
    # input_shape = (T, C) = (8, 4), layer_widths = 32, layer_num = 2, activation = ReLU
    B, T, C, H, LAYERS = 2, 8, 4, 32, 2

    key = jax.random.PRNGKey(0)
    key, kx = jax.random.split(key)
    x = jax.random.normal(kx, (B, T, C), dtype=jnp.float32)

    lstm_params, reg_params = init_params(key, LAYERS, H, T, C)

    forward = jax.jit(lstm_model_forward)
    out = jax.block_until_ready(forward(x, lstm_params, reg_params))

    ref = jax.block_until_ready(lstm_model_ref(x, lstm_params, reg_params))
    assert out.shape == (B,), f"unexpected output shape {out.shape}"
    assert jnp.allclose(out, ref, atol=1e-5, rtol=1e-5), (out, ref)

    print("KERNEL_OK")
</pallas_src>

<mosaic_0001>
module attributes {stable_mosaic.version = 11 : i64} {
  func.func @kernel(%arg0: memref<16x4xf32, #tpu.memory_space<vmem>>, %arg1: memref<102x128xf32, #tpu.memory_space<vmem>>, %arg2: memref<323x32xf32, #tpu.memory_space<vmem>>, %arg3: memref<2x1xf32, #tpu.memory_space<vmem>>) attributes {dimension_semantics = [], scalar_prefetch = 0 : i64, scratch_operands = 0 : i64, tpu.core_type = #tpu.core_type<tc>} {
    %c0 = arith.constant 0 : index
    %c0_0 = arith.constant 0 : index
    %0 = vector.load %arg1[%c0, %c0_0] : memref<102x128xf32, #tpu.memory_space<vmem>>, vector<4x128xf32>
    %c4 = arith.constant 4 : index
    %c0_1 = arith.constant 0 : index
    %1 = vector.load %arg1[%c4, %c0_1] : memref<102x128xf32, #tpu.memory_space<vmem>>, vector<32x128xf32>
    %c36 = arith.constant 36 : index
    %c0_2 = arith.constant 0 : index
    %2 = vector.load %arg1[%c36, %c0_2] : memref<102x128xf32, #tpu.memory_space<vmem>>, vector<1x128xf32>
    %c0_3 = arith.constant 0 : index
    %c0_4 = arith.constant 0 : index
    %3 = vector.load %arg0[%c0_3, %c0_4] : memref<16x4xf32, #tpu.memory_space<vmem>>, vector<16x4xf32>
    %cst = arith.constant dense<0.000000e+00> : vector<16x128xf32>
    %4 = tpu.matmul %3, %0, %cst {dimension_numbers = #tpu.dot_dimension_numbers<[1], [0], [0], [1], [0, 0, 1, 1], [], []>} : vector<16x4xf32>, vector<4x128xf32>, vector<16x128xf32> -> vector<16x128xf32>
    %5 = vector.broadcast %2 : vector<1x128xf32> to vector<16x128xf32>
    %6 = arith.addf %4, %5 : vector<16x128xf32>
    %c37 = arith.constant 37 : index
    %c0_5 = arith.constant 0 : index
    %7 = vector.load %arg1[%c37, %c0_5] : memref<102x128xf32, #tpu.memory_space<vmem>>, vector<64x128xf32>
    %c101 = arith.constant 101 : index
    %c0_6 = arith.constant 0 : index
    %8 = vector.load %arg1[%c101, %c0_6] : memref<102x128xf32, #tpu.memory_space<vmem>>, vector<1x128xf32>
    %cst_7 = arith.constant 0.000000e+00 : f32
    %9 = vector.broadcast %cst_7 : f32 to vector<2x32xf32>
    %cst_8 = arith.constant 0.000000e+00 : f32
    %10 = vector.broadcast %cst_8 : f32 to vector<2x32xf32>
    %cst_9 = arith.constant 0.000000e+00 : f32
    %11 = vector.broadcast %cst_9 : f32 to vector<2x32xf32>
    %cst_10 = arith.constant 0.000000e+00 : f32
    %12 = vector.broadcast %cst_10 : f32 to vector<2x32xf32>
    %cst_11 = arith.constant 0.000000e+00 : f32
    %13 = vector.broadcast %cst_11 : f32 to vector<2x32xf32>
    %14 = vector.extract_strided_slice %6 {offsets = [0, 0], sizes = [2, 128], strides = [1, 1]} : vector<16x128xf32> to vector<2x128xf32>
    %cst_12 = arith.constant dense<0.000000e+00> : vector<2x128xf32>
    %15 = tpu.matmul %9, %1, %cst_12 {dimension_numbers = #tpu.dot_dimension_numbers<[1], [0], [0], [1], [0, 0, 1, 1], [], []>} : vector<2x32xf32>, vector<32x128xf32>, vector<2x128xf32> -> vector<2x128xf32>
    %16 = arith.addf %14, %15 : vector<2x128xf32>
    %17 = math.tanh %16 : vector<2x128xf32>
    %18 = vector.extract_strided_slice %17 {offsets = [0, 0], sizes = [2, 32], strides = [1, 1]} : vector<2x128xf32> to vector<2x32xf32>
    %cst_13 = arith.constant 5.000000e-01 : f32
    %19 = vector.broadcast %cst_13 : f32 to vector<2x32xf32>
    %20 = arith.mulf %19, %18 : vector<2x32xf32>
    %cst_14 = arith.constant 5.000000e-01 : f32
    %21 = vector.broadcast %cst_14 : f32 to vector<2x32xf32>
    %22 = arith.addf %20, %21 : vector<2x32xf32>
    %23 = vector.extract_strided_slice %17 {offsets = [0, 32], sizes = [2, 32], strides = [1, 1]} : vector<2x128xf32> to vector<2x32xf32>
    %cst_15 = arith.constant 5.000000e-01 : f32
    %24 = vector.broadcast %cst_15 : f32 to vector<2x32xf32>
    %25 = arith.mulf %24, %23 : vector<2x32xf32>
    %cst_16 = arith.constant 5.000000e-01 : f32
    %26 = vector.broadcast %cst_16 : f32 to vector<2x32xf32>
    %27 = arith.addf %25, %26 : vector<2x32xf32>
    %28 = vector.extract_strided_slice %17 {offsets = [0, 64], sizes = [2, 32], strides = [1, 1]} : vector<2x128xf32> to vector<2x32xf32>
    %29 = vector.extract_strided_slice %17 {offsets = [0, 96], sizes = [2, 32], strides = [1, 1]} : vector<2x128xf32> to vector<2x32xf32>
    %cst_17 = arith.constant 5.000000e-01 : f32
    %30 = vector.broadcast %cst_17 : f32 to vector<2x32xf32>
    %31 = arith.mulf %30, %29 : vector<2x32xf32>
    %cst_18 = arith.constant 5.000000e-01 : f32
    %32 = vector.broadcast %cst_18 : f32 to vector<2x32xf32>
    %33 = arith.addf %31, %32 : vector<2x32xf32>
    %34 = arith.mulf %27, %11 : vector<2x32xf32>
    %35 = arith.mulf %22, %28 : vector<2x32xf32>
    %36 = arith.addf %34, %35 : vector<2x32xf32>
    %37 = math.tanh %36 : vector<2x32xf32>
    %38 = arith.mulf %33, %37 : vector<2x32xf32>
    %39 = tpu.concatenate %38, %10 in 1 : vector<2x32xf32>, vector<2x32xf32> -> vector<2x64xf32>
    %cst_19 = arith.constant dense<0.000000e+00> : vector<2x128xf32>
    %40 = tpu.matmul %39, %7, %cst_19 {dimension_numbers = #tpu.dot_dimension_numbers<[1], [0], [0], [1], [0, 0, 1, 1], [], []>} : vector<2x64xf32>, vector<64x128xf32>, vector<2x128xf32> -> vector<2x128xf32>
    %41 = vector.broadcast %8 : vector<1x128xf32> to vector<2x128xf32>
    %42 = arith.addf %40, %41 : vector<2x128xf32>
    %43 = math.tanh %42 : vector<2x128xf32>
    %44 = vector.extract_strided_slice %43 {offsets = [0, 0], sizes = [2, 32], strides = [1, 1]} : vector<2x128xf32> to vector<2x32xf32>
    %cst_20 = arith.constant 5.000000e-01 : f32
    %45 = vector.broadcast %cst_20 : f32 to vector<2x32xf32>
    %46 = arith.mulf %45, %44 : vector<2x32xf32>
    %cst_21 = arith.constant 5.000000e-01 : f32
    %47 = vector.broadcast %cst_21 : f32 to vector<2x32xf32>
    %48 = arith.addf %46, %47 : vector<2x32xf32>
    %49 = vector.extract_strided_slice %43 {offsets = [0, 32], sizes = [2, 32], strides = [1, 1]} : vector<2x128xf32> to vector<2x32xf32>
    %cst_22 = arith.constant 5.000000e-01 : f32
    %50 = vector.broadcast %cst_22 : f32 to vector<2x32xf32>
    %51 = arith.mulf %50, %49 : vector<2x32xf32>
    %cst_23 = arith.constant 5.000000e-01 : f32
    %52 = vector.broadcast %cst_23 : f32 to vector<2x32xf32>
    %53 = arith.addf %51, %52 : vector<2x32xf32>
    %54 = vector.extract_strided_slice %43 {offsets = [0, 64], sizes = [2, 32], strides = [1, 1]} : vector<2x128xf32> to vector<2x32xf32>
    %55 = vector.extract_strided_slice %43 {offsets = [0, 96], sizes = [2, 32], strides = [1, 1]} : vector<2x128xf32> to vector<2x32xf32>
    %cst_24 = arith.constant 5.000000e-01 : f32
    %56 = vector.broadcast %cst_24 : f32 to vector<2x32xf32>
    %57 = arith.mulf %56, %55 : vector<2x32xf32>
    %cst_25 = arith.constant 5.000000e-01 : f32
    %58 = vector.broadcast %cst_25 : f32 to vector<2x32xf32>
    %59 = arith.addf %57, %58 : vector<2x32xf32>
    %60 = arith.mulf %53, %12 : vector<2x32xf32>
    %61 = arith.mulf %48, %54 : vector<2x32xf32>
    %62 = arith.addf %60, %61 : vector<2x32xf32>
    %63 = math.tanh %62 : vector<2x32xf32>
    %64 = arith.mulf %59, %63 : vector<2x32xf32>
    %cst_26 = arith.constant 0.000000e+00 : f32
    %65 = vector.broadcast %cst_26 : f32 to vector<2x32xf32>
    %66 = arith.maximumf %64, %65 : vector<2x32xf32>
    %c0_27 = arith.constant 0 : index
    %c0_28 = arith.constant 0 : index
    %67 = vector.load %arg2[%c0_27, %c0_28] : memref<323x32xf32, #tpu.memory_space<vmem>>, vector<32x32xf32>
    %cst_29 = arith.constant dense<0.000000e+00> : vector<2x32xf32>
    %68 = tpu.matmul %66, %67, %cst_29 {dimension_numbers = #tpu.dot_dimension_numbers<[1], [0], [0], [1], [0, 0, 1, 1], [], []>} : vector<2x32xf32>, vector<32x32xf32>, vector<2x32xf32> -> vector<2x32xf32>
    %69 = arith.addf %13, %68 : vector<2x32xf32>
    %70 = vector.extract_strided_slice %6 {offsets = [2, 0], sizes = [2, 128], strides = [1, 1]} : vector<16x128xf32> to vector<2x128xf32>
    %cst_30 = arith.constant dense<0.000000e+00> : vector<2x128xf32>
    %71 = tpu.matmul %38, %1, %cst_30 {dimension_numbers = #tpu.dot_dimension_numbers<[1], [0], [0], [1], [0, 0, 1, 1], [], []>} : vector<2x32xf32>, vector<32x128xf32>, vector<2x128xf32> -> vector<2x128xf32>
    %72 = arith.addf %70, %71 : vector<2x128xf32>
    %73 = math.tanh %72 : vector<2x128xf32>
    %74 = vector.extract_strided_slice %73 {offsets = [0, 0], sizes = [2, 32], strides = [1, 1]} : vector<2x128xf32> to vector<2x32xf32>
    %cst_31 = arith.constant 5.000000e-01 : f32
    %75 = vector.broadcast %cst_31 : f32 to vector<2x32xf32>
    %76 = arith.mulf %75, %74 : vector<2x32xf32>
    %cst_32 = arith.constant 5.000000e-01 : f32
    %77 = vector.broadcast %cst_32 : f32 to vector<2x32xf32>
    %78 = arith.addf %76, %77 : vector<2x32xf32>
    %79 = vector.extract_strided_slice %73 {offsets = [0, 32], sizes = [2, 32], strides = [1, 1]} : vector<2x128xf32> to vector<2x32xf32>
    %cst_33 = arith.constant 5.000000e-01 : f32
    %80 = vector.broadcast %cst_33 : f32 to vector<2x32xf32>
    %81 = arith.mulf %80, %79 : vector<2x32xf32>
    %cst_34 = arith.constant 5.000000e-01 : f32
    %82 = vector.broadcast %cst_34 : f32 to vector<2x32xf32>
    %83 = arith.addf %81, %82 : vector<2x32xf32>
    %84 = vector.extract_strided_slice %73 {offsets = [0, 64], sizes = [2, 32], strides = [1, 1]} : vector<2x128xf32> to vector<2x32xf32>
    %85 = vector.extract_strided_slice %73 {offsets = [0, 96], sizes = [2, 32], strides = [1, 1]} : vector<2x128xf32> to vector<2x32xf32>
    %cst_35 = arith.constant 5.000000e-01 : f32
    %86 = vector.broadcast %cst_35 : f32 to vector<2x32xf32>
    %87 = arith.mulf %86, %85 : vector<2x32xf32>
    %cst_36 = arith.constant 5.000000e-01 : f32
    %88 = vector.broadcast %cst_36 : f32 to vector<2x32xf32>
    %89 = arith.addf %87, %88 : vector<2x32xf32>
    %90 = arith.mulf %83, %36 : vector<2x32xf32>
    %91 = arith.mulf %78, %84 : vector<2x32xf32>
    %92 = arith.addf %90, %91 : vector<2x32xf32>
    %93 = math.tanh %92 : vector<2x32xf32>
    %94 = arith.mulf %89, %93 : vector<2x32xf32>
    %95 = tpu.concatenate %94, %64 in 1 : vector<2x32xf32>, vector<2x32xf32> -> vector<2x64xf32>
    %cst_37 = arith.constant dense<0.000000e+00> : vector<2x128xf32>
    %96 = tpu.matmul %95, %7, %cst_37 {dimension_numbers = #tpu.dot_dimension_numbers<[1], [0], [0], [1], [0, 0, 1, 1], [], []>} : vector<2x64xf32>, vector<64x128xf32>, vector<2x128xf32> -> vector<2x128xf32>
    %97 = vector.broadcast %8 : vector<1x128xf32> to vector<2x128xf32>
    %98 = arith.addf %96, %97 : vector<2x128xf32>
    %99 = math.tanh %98 : vector<2x128xf32>
    %100 = vector.extract_strided_slice %99 {offsets = [0, 0], sizes = [2, 32], strides = [1, 1]} : vector<2x128xf32> to vector<2x32xf32>
    %cst_38 = arith.constant 5.000000e-01 : f32
    %101 = vector.broadcast %cst_38 : f32 to vector<2x32xf32>
    %102 = arith.mulf %101, %100 : vector<2x32xf32>
    %cst_39 = arith.constant 5.000000e-01 : f32
    %103 = vector.broadcast %cst_39 : f32 to vector<2x32xf32>
    %104 = arith.addf %102, %103 : vector<2x32xf32>
    %105 = vector.extract_strided_slice %99 {offsets = [0, 32], sizes = [2, 32], strides = [1, 1]} : vector<2x128xf32> to vector<2x32xf32>
    %cst_40 = arith.constant 5.000000e-01 : f32
    %106 = vector.broadcast %cst_40 : f32 to vector<2x32xf32>
    %107 = arith.mulf %106, %105 : vector<2x32xf32>
    %cst_41 = arith.constant 5.000000e-01 : f32
    %108 = vector.broadcast %cst_41 : f32 to vector<2x32xf32>
    %109 = arith.addf %107, %108 : vector<2x32xf32>
    %110 = vector.extract_strided_slice %99 {offsets = [0, 64], sizes = [2, 32], strides = [1, 1]} : vector<2x128xf32> to vector<2x32xf32>
    %111 = vector.extract_strided_slice %99 {offsets = [0, 96], sizes = [2, 32], strides = [1, 1]} : vector<2x128xf32> to vector<2x32xf32>
    %cst_42 = arith.constant 5.000000e-01 : f32
    %112 = vector.broadcast %cst_42 : f32 to vector<2x32xf32>
    %113 = arith.mulf %112, %111 : vector<2x32xf32>
    %cst_43 = arith.constant 5.000000e-01 : f32
    %114 = vector.broadcast %cst_43 : f32 to vector<2x32xf32>
    %115 = arith.addf %113, %114 : vector<2x32xf32>
    %116 = arith.mulf %109, %62 : vector<2x32xf32>
    %117 = arith.mulf %104, %110 : vector<2x32xf32>
    %118 = arith.addf %116, %117 : vector<2x32xf32>
    %119 = math.tanh %118 : vector<2x32xf32>
    %120 = arith.mulf %115, %119 : vector<2x32xf32>
    %cst_44 = arith.constant 0.000000e+00 : f32
    %121 = vector.broadcast %cst_44 : f32 to vector<2x32xf32>
    %122 = arith.maximumf %120, %121 : vector<2x32xf32>
    %c32 = arith.constant 32 : index
    %c0_45 = arith.constant 0 : index
    %123 = vector.load %arg2[%c32, %c0_45] : memref<323x32xf32, #tpu.memory_space<vmem>>, vector<32x32xf32>
    %cst_46 = arith.constant dense<0.000000e+00> : vector<2x32xf32>
    %124 = tpu.matmul %122, %123, %cst_46 {dimension_numbers = #tpu.dot_dimension_numbers<[1], [0], [0], [1], [0, 0, 1, 1], [], []>} : vector<2x32xf32>, vector<32x32xf32>, vector<2x32xf32> -> vector<2x32xf32>
    %125 = arith.addf %69, %124 : vector<2x32xf32>
    %126 = vector.extract_strided_slice %6 {offsets = [4, 0], sizes = [2, 128], strides = [1, 1]} : vector<16x128xf32> to vector<2x128xf32>
    %cst_47 = arith.constant dense<0.000000e+00> : vector<2x128xf32>
    %127 = tpu.matmul %94, %1, %cst_47 {dimension_numbers = #tpu.dot_dimension_numbers<[1], [0], [0], [1], [0, 0, 1, 1], [], []>} : vector<2x32xf32>, vector<32x128xf32>, vector<2x128xf32> -> vector<2x128xf32>
    %128 = arith.addf %126, %127 : vector<2x128xf32>
    %129 = math.tanh %128 : vector<2x128xf32>
    %130 = vector.extract_strided_slice %129 {offsets = [0, 0], sizes = [2, 32], strides = [1, 1]} : vector<2x128xf32> to vector<2x32xf32>
    %cst_48 = arith.constant 5.000000e-01 : f32
    %131 = vector.broadcast %cst_48 : f32 to vector<2x32xf32>
    %132 = arith.mulf %131, %130 : vector<2x32xf32>
    %cst_49 = arith.constant 5.000000e-01 : f32
    %133 = vector.broadcast %cst_49 : f32 to vector<2x32xf32>
    %134 = arith.addf %132, %133 : vector<2x32xf32>
    %135 = vector.extract_strided_slice %129 {offsets = [0, 32], sizes = [2, 32], strides = [1, 1]} : vector<2x128xf32> to vector<2x32xf32>
    %cst_50 = arith.constant 5.000000e-01 : f32
    %136 = vector.broadcast %cst_50 : f32 to vector<2x32xf32>
    %137 = arith.mulf %136, %135 : vector<2x32xf32>
    %cst_51 = arith.constant 5.000000e-01 : f32
    %138 = vector.broadcast %cst_51 : f32 to vector<2x32xf32>
    %139 = arith.addf %137, %138 : vector<2x32xf32>
    %140 = vector.extract_strided_slice %129 {offsets = [0, 64], sizes = [2, 32], strides = [1, 1]} : vector<2x128xf32> to vector<2x32xf32>
    %141 = vector.extract_strided_slice %129 {offsets = [0, 96], sizes = [2, 32], strides = [1, 1]} : vector<2x128xf32> to vector<2x32xf32>
    %cst_52 = arith.constant 5.000000e-01 : f32
    %142 = vector.broadcast %cst_52 : f32 to vector<2x32xf32>
    %143 = arith.mulf %142, %141 : vector<2x32xf32>
    %cst_53 = arith.constant 5.000000e-01 : f32
    %144 = vector.broadcast %cst_53 : f32 to vector<2x32xf32>
    %145 = arith.addf %143, %144 : vector<2x32xf32>
    %146 = arith.mulf %139, %92 : vector<2x32xf32>
    %147 = arith.mulf %134, %140 : vector<2x32xf32>
    %148 = arith.addf %146, %147 : vector<2x32xf32>
    %149 = math.tanh %148 : vector<2x32xf32>
    %150 = arith.mulf %145, %149 : vector<2x32xf32>
    %151 = tpu.concatenate %150, %120 in 1 : vector<2x32xf32>, vector<2x32xf32> -> vector<2x64xf32>
    %cst_54 = arith.constant dense<0.000000e+00> : vector<2x128xf32>
    %152 = tpu.matmul %151, %7, %cst_54 {dimension_numbers = #tpu.dot_dimension_numbers<[1], [0], [0], [1], [0, 0, 1, 1], [], []>} : vector<2x64xf32>, vector<64x128xf32>, vector<2x128xf32> -> vector<2x128xf32>
    %153 = vector.broadcast %8 : vector<1x128xf32> to vector<2x128xf32>
    %154 = arith.addf %152, %153 : vector<2x128xf32>
    %155 = math.tanh %154 : vector<2x128xf32>
    %156 = vector.extract_strided_slice %155 {offsets = [0, 0], sizes = [2, 32], strides = [1, 1]} : vector<2x128xf32> to vector<2x32xf32>
    %cst_55 = arith.constant 5.000000e-01 : f32
    %157 = vector.broadcast %cst_55 : f32 to vector<2x32xf32>
    %158 = arith.mulf %157, %156 : vector<2x32xf32>
    %cst_56 = arith.constant 5.000000e-01 : f32
    %159 = vector.broadcast %cst_56 : f32 to vector<2x32xf32>
    %160 = arith.addf %158, %159 : vector<2x32xf32>
    %161 = vector.extract_strided_slice %155 {offsets = [0, 32], sizes = [2, 32], strides = [1, 1]} : vector<2x128xf32> to vector<2x32xf32>
    %cst_57 = arith.constant 5.000000e-01 : f32
    %162 = vector.broadcast %cst_57 : f32 to vector<2x32xf32>
    %163 = arith.mulf %162, %161 : vector<2x32xf32>
    %cst_58 = arith.constant 5.000000e-01 : f32
    %164 = vector.broadcast %cst_58 : f32 to vector<2x32xf32>
    %165 = arith.addf %163, %164 : vector<2x32xf32>
    %166 = vector.extract_strided_slice %155 {offsets = [0, 64], sizes = [2, 32], strides = [1, 1]} : vector<2x128xf32> to vector<2x32xf32>
    %167 = vector.extract_strided_slice %155 {offsets = [0, 96], sizes = [2, 32], strides = [1, 1]} : vector<2x128xf32> to vector<2x32xf32>
    %cst_59 = arith.constant 5.000000e-01 : f32
    %168 = vector.broadcast %cst_59 : f32 to vector<2x32xf32>
    %169 = arith.mulf %168, %167 : vector<2x32xf32>
    %cst_60 = arith.constant 5.000000e-01 : f32
    %170 = vector.broadcast %cst_60 : f32 to vector<2x32xf32>
    %171 = arith.addf %169, %170 : vector<2x32xf32>
    %172 = arith.mulf %165, %118 : vector<2x32xf32>
    %173 = arith.mulf %160, %166 : vector<2x32xf32>
    %174 = arith.addf %172, %173 : vector<2x32xf32>
    %175 = math.tanh %174 : vector<2x32xf32>
    %176 = arith.mulf %171, %175 : vector<2x32xf32>
    %cst_61 = arith.constant 0.000000e+00 : f32
    %177 = vector.broadcast %cst_61 : f32 to vector<2x32xf32>
    %178 = arith.maximumf %176, %177 : vector<2x32xf32>
    %c64 = arith.constant 64 : index
    %c0_62 = arith.constant 0 : index
    %179 = vector.load %arg2[%c64, %c0_62] : memref<323x32xf32, #tpu.memory_space<vmem>>, vector<32x32xf32>
    %cst_63 = arith.constant dense<0.000000e+00> : vector<2x32xf32>
    %180 = tpu.matmul %178, %179, %cst_63 {dimension_numbers = #tpu.dot_dimension_numbers<[1], [0], [0], [1], [0, 0, 1, 1], [], []>} : vector<2x32xf32>, vector<32x32xf32>, vector<2x32xf32> -> vector<2x32xf32>
    %181 = arith.addf %125, %180 : vector<2x32xf32>
    %182 = vector.extract_strided_slice %6 {offsets = [6, 0], sizes = [2, 128], strides = [1, 1]} : vector<16x128xf32> to vector<2x128xf32>
    %cst_64 = arith.constant dense<0.000000e+00> : vector<2x128xf32>
    %183 = tpu.matmul %150, %1, %cst_64 {dimension_numbers = #tpu.dot_dimension_numbers<[1], [0], [0], [1], [0, 0, 1, 1], [], []>} : vector<2x32xf32>, vector<32x128xf32>, vector<2x128xf32> -> vector<2x128xf32>
    %184 = arith.addf %182, %183 : vector<2x128xf32>
    %185 = math.tanh %184 : vector<2x128xf32>
    %186 = vector.extract_strided_slice %185 {offsets = [0, 0], sizes = [2, 32], strides = [1, 1]} : vector<2x128xf32> to vector<2x32xf32>
    %cst_65 = arith.constant 5.000000e-01 : f32
    %187 = vector.broadcast %cst_65 : f32 to vector<2x32xf32>
    %188 = arith.mulf %187, %186 : vector<2x32xf32>
    %cst_66 = arith.constant 5.000000e-01 : f32
    %189 = vector.broadcast %cst_66 : f32 to vector<2x32xf32>
    %190 = arith.addf %188, %189 : vector<2x32xf32>
    %191 = vector.extract_strided_slice %185 {offsets = [0, 32], sizes = [2, 32], strides = [1, 1]} : vector<2x128xf32> to vector<2x32xf32>
    %cst_67 = arith.constant 5.000000e-01 : f32
    %192 = vector.broadcast %cst_67 : f32 to vector<2x32xf32>
    %193 = arith.mulf %192, %191 : vector<2x32xf32>
    %cst_68 = arith.constant 5.000000e-01 : f32
    %194 = vector.broadcast %cst_68 : f32 to vector<2x32xf32>
    %195 = arith.addf %193, %194 : vector<2x32xf32>
    %196 = vector.extract_strided_slice %185 {offsets = [0, 64], sizes = [2, 32], strides = [1, 1]} : vector<2x128xf32> to vector<2x32xf32>
    %197 = vector.extract_strided_slice %185 {offsets = [0, 96], sizes = [2, 32], strides = [1, 1]} : vector<2x128xf32> to vector<2x32xf32>
    %cst_69 = arith.constant 5.000000e-01 : f32
    %198 = vector.broadcast %cst_69 : f32 to vector<2x32xf32>
    %199 = arith.mulf %198, %197 : vector<2x32xf32>
    %cst_70 = arith.constant 5.000000e-01 : f32
    %200 = vector.broadcast %cst_70 : f32 to vector<2x32xf32>
    %201 = arith.addf %199, %200 : vector<2x32xf32>
    %202 = arith.mulf %195, %148 : vector<2x32xf32>
    %203 = arith.mulf %190, %196 : vector<2x32xf32>
    %204 = arith.addf %202, %203 : vector<2x32xf32>
    %205 = math.tanh %204 : vector<2x32xf32>
    %206 = arith.mulf %201, %205 : vector<2x32xf32>
    %207 = tpu.concatenate %206, %176 in 1 : vector<2x32xf32>, vector<2x32xf32> -> vector<2x64xf32>
    %cst_71 = arith.constant dense<0.000000e+00> : vector<2x128xf32>
    %208 = tpu.matmul %207, %7, %cst_71 {dimension_numbers = #tpu.dot_dimension_numbers<[1], [0], [0], [1], [0, 0, 1, 1], [], []>} : vector<2x64xf32>, vector<64x128xf32>, vector<2x128xf32> -> vector<2x128xf32>
    %209 = vector.broadcast %8 : vector<1x128xf32> to vector<2x128xf32>
    %210 = arith.addf %208, %209 : vector<2x128xf32>
    %211 = math.tanh %210 : vector<2x128xf32>
    %212 = vector.extract_strided_slice %211 {offsets = [0, 0], sizes = [2, 32], strides = [1, 1]} : vector<2x128xf32> to vector<2x32xf32>
    %cst_72 = arith.constant 5.000000e-01 : f32
    %213 = vector.broadcast %cst_72 : f32 to vector<2x32xf32>
    %214 = arith.mulf %213, %212 : vector<2x32xf32>
    %cst_73 = arith.constant 5.000000e-01 : f32
    %215 = vector.broadcast %cst_73 : f32 to vector<2x32xf32>
    %216 = arith.addf %214, %215 : vector<2x32xf32>
    %217 = vector.extract_strided_slice %211 {offsets = [0, 32], sizes = [2, 32], strides = [1, 1]} : vector<2x128xf32> to vector<2x32xf32>
    %cst_74 = arith.constant 5.000000e-01 : f32
    %218 = vector.broadcast %cst_74 : f32 to vector<2x32xf32>
    %219 = arith.mulf %218, %217 : vector<2x32xf32>
    %cst_75 = arith.constant 5.000000e-01 : f32
    %220 = vector.broadcast %cst_75 : f32 to vector<2x32xf32>
    %221 = arith.addf %219, %220 : vector<2x32xf32>
    %222 = vector.extract_strided_slice %211 {offsets = [0, 64], sizes = [2, 32], strides = [1, 1]} : vector<2x128xf32> to vector<2x32xf32>
    %223 = vector.extract_strided_slice %211 {offsets = [0, 96], sizes = [2, 32], strides = [1, 1]} : vector<2x128xf32> to vector<2x32xf32>
    %cst_76 = arith.constant 5.000000e-01 : f32
    %224 = vector.broadcast %cst_76 : f32 to vector<2x32xf32>
    %225 = arith.mulf %224, %223 : vector<2x32xf32>
    %cst_77 = arith.constant 5.000000e-01 : f32
    %226 = vector.broadcast %cst_77 : f32 to vector<2x32xf32>
    %227 = arith.addf %225, %226 : vector<2x32xf32>
    %228 = arith.mulf %221, %174 : vector<2x32xf32>
    %229 = arith.mulf %216, %222 : vector<2x32xf32>
    %230 = arith.addf %228, %229 : vector<2x32xf32>
    %231 = math.tanh %230 : vector<2x32xf32>
    %232 = arith.mulf %227, %231 : vector<2x32xf32>
    %cst_78 = arith.constant 0.000000e+00 : f32
    %233 = vector.broadcast %cst_78 : f32 to vector<2x32xf32>
    %234 = arith.maximumf %232, %233 : vector<2x32xf32>
    %c96 = arith.constant 96 : index
    %c0_79 = arith.constant 0 : index
    %235 = vector.load %arg2[%c96, %c0_79] : memref<323x32xf32, #tpu.memory_space<vmem>>, vector<32x32xf32>
    %cst_80 = arith.constant dense<0.000000e+00> : vector<2x32xf32>
    %236 = tpu.matmul %234, %235, %cst_80 {dimension_numbers = #tpu.dot_dimension_numbers<[1], [0], [0], [1], [0, 0, 1, 1], [], []>} : vector<2x32xf32>, vector<32x32xf32>, vector<2x32xf32> -> vector<2x32xf32>
    %237 = arith.addf %181, %236 : vector<2x32xf32>
    %238 = vector.extract_strided_slice %6 {offsets = [8, 0], sizes = [2, 128], strides = [1, 1]} : vector<16x128xf32> to vector<2x128xf32>
    %cst_81 = arith.constant dense<0.000000e+00> : vector<2x128xf32>
    %239 = tpu.matmul %206, %1, %cst_81 {dimension_numbers = #tpu.dot_dimension_numbers<[1], [0], [0], [1], [0, 0, 1, 1], [], []>} : vector<2x32xf32>, vector<32x128xf32>, vector<2x128xf32> -> vector<2x128xf32>
    %240 = arith.addf %238, %239 : vector<2x128xf32>
    %241 = math.tanh %240 : vector<2x128xf32>
    %242 = vector.extract_strided_slice %241 {offsets = [0, 0], sizes = [2, 32], strides = [1, 1]} : vector<2x128xf32> to vector<2x32xf32>
    %cst_82 = arith.constant 5.000000e-01 : f32
    %243 = vector.broadcast %cst_82 : f32 to vector<2x32xf32>
    %244 = arith.mulf %243, %242 : vector<2x32xf32>
    %cst_83 = arith.constant 5.000000e-01 : f32
    %245 = vector.broadcast %cst_83 : f32 to vector<2x32xf32>
    %246 = arith.addf %244, %245 : vector<2x32xf32>
    %247 = vector.extract_strided_slice %241 {offsets = [0, 32], sizes = [2, 32], strides = [1, 1]} : vector<2x128xf32> to vector<2x32xf32>
    %cst_84 = arith.constant 5.000000e-01 : f32
    %248 = vector.broadcast %cst_84 : f32 to vector<2x32xf32>
    %249 = arith.mulf %248, %247 : vector<2x32xf32>
    %cst_85 = arith.constant 5.000000e-01 : f32
    %250 = vector.broadcast %cst_85 : f32 to vector<2x32xf32>
    %251 = arith.addf %249, %250 : vector<2x32xf32>
    %252 = vector.extract_strided_slice %241 {offsets = [0, 64], sizes = [2, 32], strides = [1, 1]} : vector<2x128xf32> to vector<2x32xf32>
    %253 = vector.extract_strided_slice %241 {offsets = [0, 96], sizes = [2, 32], strides = [1, 1]} : vector<2x128xf32> to vector<2x32xf32>
    %cst_86 = arith.constant 5.000000e-01 : f32
    %254 = vector.broadcast %cst_86 : f32 to vector<2x32xf32>
    %255 = arith.mulf %254, %253 : vector<2x32xf32>
    %cst_87 = arith.constant 5.000000e-01 : f32
    %256 = vector.broadcast %cst_87 : f32 to vector<2x32xf32>
    %257 = arith.addf %255, %256 : vector<2x32xf32>
    %258 = arith.mulf %251, %204 : vector<2x32xf32>
    %259 = arith.mulf %246, %252 : vector<2x32xf32>
    %260 = arith.addf %258, %259 : vector<2x32xf32>
    %261 = math.tanh %260 : vector<2x32xf32>
    %262 = arith.mulf %257, %261 : vector<2x32xf32>
    %263 = tpu.concatenate %262, %232 in 1 : vector<2x32xf32>, vector<2x32xf32> -> vector<2x64xf32>
    %cst_88 = arith.constant dense<0.000000e+00> : vector<2x128xf32>
    %264 = tpu.matmul %263, %7, %cst_88 {dimension_numbers = #tpu.dot_dimension_numbers<[1], [0], [0], [1], [0, 0, 1, 1], [], []>} : vector<2x64xf32>, vector<64x128xf32>, vector<2x128xf32> -> vector<2x128xf32>
    %265 = vector.broadcast %8 : vector<1x128xf32> to vector<2x128xf32>
    %266 = arith.addf %264, %265 : vector<2x128xf32>
    %267 = math.tanh %266 : vector<2x128xf32>
    %268 = vector.extract_strided_slice %267 {offsets = [0, 0], sizes = [2, 32], strides = [1, 1]} : vector<2x128xf32> to vector<2x32xf32>
    %cst_89 = arith.constant 5.000000e-01 : f32
    %269 = vector.broadcast %cst_89 : f32 to vector<2x32xf32>
    %270 = arith.mulf %269, %268 : vector<2x32xf32>
    %cst_90 = arith.constant 5.000000e-01 : f32
    %271 = vector.broadcast %cst_90 : f32 to vector<2x32xf32>
    %272 = arith.addf %270, %271 : vector<2x32xf32>
    %273 = vector.extract_strided_slice %267 {offsets = [0, 32], sizes = [2, 32], strides = [1, 1]} : vector<2x128xf32> to vector<2x32xf32>
    %cst_91 = arith.constant 5.000000e-01 : f32
    %274 = vector.broadcast %cst_91 : f32 to vector<2x32xf32>
    %275 = arith.mulf %274, %273 : vector<2x32xf32>
    %cst_92 = arith.constant 5.000000e-01 : f32
    %276 = vector.broadcast %cst_92 : f32 to vector<2x32xf32>
    %277 = arith.addf %275, %276 : vector<2x32xf32>
    %278 = vector.extract_strided_slice %267 {offsets = [0, 64], sizes = [2, 32], strides = [1, 1]} : vector<2x128xf32> to vector<2x32xf32>
    %279 = vector.extract_strided_slice %267 {offsets = [0, 96], sizes = [2, 32], strides = [1, 1]} : vector<2x128xf32> to vector<2x32xf32>
    %cst_93 = arith.constant 5.000000e-01 : f32
    %280 = vector.broadcast %cst_93 : f32 to vector<2x32xf32>
    %281 = arith.mulf %280, %279 : vector<2x32xf32>
    %cst_94 = arith.constant 5.000000e-01 : f32
    %282 = vector.broadcast %cst_94 : f32 to vector<2x32xf32>
    %283 = arith.addf %281, %282 : vector<2x32xf32>
    %284 = arith.mulf %277, %230 : vector<2x32xf32>
    %285 = arith.mulf %272, %278 : vector<2x32xf32>
    %286 = arith.addf %284, %285 : vector<2x32xf32>
    %287 = math.tanh %286 : vector<2x32xf32>
    %288 = arith.mulf %283, %287 : vector<2x32xf32>
    %cst_95 = arith.constant 0.000000e+00 : f32
    %289 = vector.broadcast %cst_95 : f32 to vector<2x32xf32>
    %290 = arith.maximumf %288, %289 : vector<2x32xf32>
    %c128 = arith.constant 128 : index
    %c0_96 = arith.constant 0 : index
    %291 = vector.load %arg2[%c128, %c0_96] : memref<323x32xf32, #tpu.memory_space<vmem>>, vector<32x32xf32>
    %cst_97 = arith.constant dense<0.000000e+00> : vector<2x32xf32>
    %292 = tpu.matmul %290, %291, %cst_97 {dimension_numbers = #tpu.dot_dimension_numbers<[1], [0], [0], [1], [0, 0, 1, 1], [], []>} : vector<2x32xf32>, vector<32x32xf32>, vector<2x32xf32> -> vector<2x32xf32>
    %293 = arith.addf %237, %292 : vector<2x32xf32>
    %294 = vector.extract_strided_slice %6 {offsets = [10, 0], sizes = [2, 128], strides = [1, 1]} : vector<16x128xf32> to vector<2x128xf32>
    %cst_98 = arith.constant dense<0.000000e+00> : vector<2x128xf32>
    %295 = tpu.matmul %262, %1, %cst_98 {dimension_numbers = #tpu.dot_dimension_numbers<[1], [0], [0], [1], [0, 0, 1, 1], [], []>} : vector<2x32xf32>, vector<32x128xf32>, vector<2x128xf32> -> vector<2x128xf32>
    %296 = arith.addf %294, %295 : vector<2x128xf32>
    %297 = math.tanh %296 : vector<2x128xf32>
    %298 = vector.extract_strided_slice %297 {offsets = [0, 0], sizes = [2, 32], strides = [1, 1]} : vector<2x128xf32> to vector<2x32xf32>
    %cst_99 = arith.constant 5.000000e-01 : f32
    %299 = vector.broadcast %cst_99 : f32 to vector<2x32xf32>
    %300 = arith.mulf %299, %298 : vector<2x32xf32>
    %cst_100 = arith.constant 5.000000e-01 : f32
    %301 = vector.broadcast %cst_100 : f32 to vector<2x32xf32>
    %302 = arith.addf %300, %301 : vector<2x32xf32>
    %303 = vector.extract_strided_slice %297 {offsets = [0, 32], sizes = [2, 32], strides = [1, 1]} : vector<2x128xf32> to vector<2x32xf32>
    %cst_101 = arith.constant 5.000000e-01 : f32
    %304 = vector.broadcast %cst_101 : f32 to vector<2x32xf32>
    %305 = arith.mulf %304, %303 : vector<2x32xf32>
    %cst_102 = arith.constant 5.000000e-01 : f32
    %306 = vector.broadcast %cst_102 : f32 to vector<2x32xf32>
    %307 = arith.addf %305, %306 : vector<2x32xf32>
    %308 = vector.extract_strided_slice %297 {offsets = [0, 64], sizes = [2, 32], strides = [1, 1]} : vector<2x128xf32> to vector<2x32xf32>
    %309 = vector.extract_strided_slice %297 {offsets = [0, 96], sizes = [2, 32], strides = [1, 1]} : vector<2x128xf32> to vector<2x32xf32>
    %cst_103 = arith.constant 5.000000e-01 : f32
    %310 = vector.broadcast %cst_103 : f32 to vector<2x32xf32>
    %311 = arith.mulf %310, %309 : vector<2x32xf32>
    %cst_104 = arith.constant 5.000000e-01 : f32
    %312 = vector.broadcast %cst_104 : f32 to vector<2x32xf32>
    %313 = arith.addf %311, %312 : vector<2x32xf32>
    %314 = arith.mulf %307, %260 : vector<2x32xf32>
    %315 = arith.mulf %302, %308 : vector<2x32xf32>
    %316 = arith.addf %314, %315 : vector<2x32xf32>
    %317 = math.tanh %316 : vector<2x32xf32>
    %318 = arith.mulf %313, %317 : vector<2x32xf32>
    %319 = tpu.concatenate %318, %288 in 1 : vector<2x32xf32>, vector<2x32xf32> -> vector<2x64xf32>
    %cst_105 = arith.constant dense<0.000000e+00> : vector<2x128xf32>
    %320 = tpu.matmul %319, %7, %cst_105 {dimension_numbers = #tpu.dot_dimension_numbers<[1], [0], [0], [1], [0, 0, 1, 1], [], []>} : vector<2x64xf32>, vector<64x128xf32>, vector<2x128xf32> -> vector<2x128xf32>
    %321 = vector.broadcast %8 : vector<1x128xf32> to vector<2x128xf32>
    %322 = arith.addf %320, %321 : vector<2x128xf32>
    %323 = math.tanh %322 : vector<2x128xf32>
    %324 = vector.extract_strided_slice %323 {offsets = [0, 0], sizes = [2, 32], strides = [1, 1]} : vector<2x128xf32> to vector<2x32xf32>
    %cst_106 = arith.constant 5.000000e-01 : f32
    %325 = vector.broadcast %cst_106 : f32 to vector<2x32xf32>
    %326 = arith.mulf %325, %324 : vector<2x32xf32>
    %cst_107 = arith.constant 5.000000e-01 : f32
    %327 = vector.broadcast %cst_107 : f32 to vector<2x32xf32>
    %328 = arith.addf %326, %327 : vector<2x32xf32>
    %329 = vector.extract_strided_slice %323 {offsets = [0, 32], sizes = [2, 32], strides = [1, 1]} : vector<2x128xf32> to vector<2x32xf32>
    %cst_108 = arith.constant 5.000000e-01 : f32
    %330 = vector.broadcast %cst_108 : f32 to vector<2x32xf32>
    %331 = arith.mulf %330, %329 : vector<2x32xf32>
    %cst_109 = arith.constant 5.000000e-01 : f32
    %332 = vector.broadcast %cst_109 : f32 to vector<2x32xf32>
    %333 = arith.addf %331, %332 : vector<2x32xf32>
    %334 = vector.extract_strided_slice %323 {offsets = [0, 64], sizes = [2, 32], strides = [1, 1]} : vector<2x128xf32> to vector<2x32xf32>
    %335 = vector.extract_strided_slice %323 {offsets = [0, 96], sizes = [2, 32], strides = [1, 1]} : vector<2x128xf32> to vector<2x32xf32>
    %cst_110 = arith.constant 5.000000e-01 : f32
    %336 = vector.broadcast %cst_110 : f32 to vector<2x32xf32>
    %337 = arith.mulf %336, %335 : vector<2x32xf32>
    %cst_111 = arith.constant 5.000000e-01 : f32
    %338 = vector.broadcast %cst_111 : f32 to vector<2x32xf32>
    %339 = arith.addf %337, %338 : vector<2x32xf32>
    %340 = arith.mulf %333, %286 : vector<2x32xf32>
    %341 = arith.mulf %328, %334 : vector<2x32xf32>
    %342 = arith.addf %340, %341 : vector<2x32xf32>
    %343 = math.tanh %342 : vector<2x32xf32>
    %344 = arith.mulf %339, %343 : vector<2x32xf32>
    %cst_112 = arith.constant 0.000000e+00 : f32
    %345 = vector.broadcast %cst_112 : f32 to vector<2x32xf32>
    %346 = arith.maximumf %344, %345 : vector<2x32xf32>
    %c160 = arith.constant 160 : index
    %c0_113 = arith.constant 0 : index
    %347 = vector.load %arg2[%c160, %c0_113] : memref<323x32xf32, #tpu.memory_space<vmem>>, vector<32x32xf32>
    %cst_114 = arith.constant dense<0.000000e+00> : vector<2x32xf32>
    %348 = tpu.matmul %346, %347, %cst_114 {dimension_numbers = #tpu.dot_dimension_numbers<[1], [0], [0], [1], [0, 0, 1, 1], [], []>} : vector<2x32xf32>, vector<32x32xf32>, vector<2x32xf32> -> vector<2x32xf32>
    %349 = arith.addf %293, %348 : vector<2x32xf32>
    %350 = vector.extract_strided_slice %6 {offsets = [12, 0], sizes = [2, 128], strides = [1, 1]} : vector<16x128xf32> to vector<2x128xf32>
    %cst_115 = arith.constant dense<0.000000e+00> : vector<2x128xf32>
    %351 = tpu.matmul %318, %1, %cst_115 {dimension_numbers = #tpu.dot_dimension_numbers<[1], [0], [0], [1], [0, 0, 1, 1], [], []>} : vector<2x32xf32>, vector<32x128xf32>, vector<2x128xf32> -> vector<2x128xf32>
    %352 = arith.addf %350, %351 : vector<2x128xf32>
    %353 = math.tanh %352 : vector<2x128xf32>
    %354 = vector.extract_strided_slice %353 {offsets = [0, 0], sizes = [2, 32], strides = [1, 1]} : vector<2x128xf32> to vector<2x32xf32>
    %cst_116 = arith.constant 5.000000e-01 : f32
    %355 = vector.broadcast %cst_116 : f32 to vector<2x32xf32>
    %356 = arith.mulf %355, %354 : vector<2x32xf32>
    %cst_117 = arith.constant 5.000000e-01 : f32
    %357 = vector.broadcast %cst_117 : f32 to vector<2x32xf32>
    %358 = arith.addf %356, %357 : vector<2x32xf32>
    %359 = vector.extract_strided_slice %353 {offsets = [0, 32], sizes = [2, 32], strides = [1, 1]} : vector<2x128xf32> to vector<2x32xf32>
    %cst_118 = arith.constant 5.000000e-01 : f32
    %360 = vector.broadcast %cst_118 : f32 to vector<2x32xf32>
    %361 = arith.mulf %360, %359 : vector<2x32xf32>
    %cst_119 = arith.constant 5.000000e-01 : f32
    %362 = vector.broadcast %cst_119 : f32 to vector<2x32xf32>
    %363 = arith.addf %361, %362 : vector<2x32xf32>
    %364 = vector.extract_strided_slice %353 {offsets = [0, 64], sizes = [2, 32], strides = [1, 1]} : vector<2x128xf32> to vector<2x32xf32>
    %365 = vector.extract_strided_slice %353 {offsets = [0, 96], sizes = [2, 32], strides = [1, 1]} : vector<2x128xf32> to vector<2x32xf32>
    %cst_120 = arith.constant 5.000000e-01 : f32
    %366 = vector.broadcast %cst_120 : f32 to vector<2x32xf32>
    %367 = arith.mulf %366, %365 : vector<2x32xf32>
    %cst_121 = arith.constant 5.000000e-01 : f32
    %368 = vector.broadcast %cst_121 : f32 to vector<2x32xf32>
    %369 = arith.addf %367, %368 : vector<2x32xf32>
    %370 = arith.mulf %363, %316 : vector<2x32xf32>
    %371 = arith.mulf %358, %364 : vector<2x32xf32>
    %372 = arith.addf %370, %371 : vector<2x32xf32>
    %373 = math.tanh %372 : vector<2x32xf32>
    %374 = arith.mulf %369, %373 : vector<2x32xf32>
    %375 = tpu.concatenate %374, %344 in 1 : vector<2x32xf32>, vector<2x32xf32> -> vector<2x64xf32>
    %cst_122 = arith.constant dense<0.000000e+00> : vector<2x128xf32>
    %376 = tpu.matmul %375, %7, %cst_122 {dimension_numbers = #tpu.dot_dimension_numbers<[1], [0], [0], [1], [0, 0, 1, 1], [], []>} : vector<2x64xf32>, vector<64x128xf32>, vector<2x128xf32> -> vector<2x128xf32>
    %377 = vector.broadcast %8 : vector<1x128xf32> to vector<2x128xf32>
    %378 = arith.addf %376, %377 : vector<2x128xf32>
    %379 = math.tanh %378 : vector<2x128xf32>
    %380 = vector.extract_strided_slice %379 {offsets = [0, 0], sizes = [2, 32], strides = [1, 1]} : vector<2x128xf32> to vector<2x32xf32>
    %cst_123 = arith.constant 5.000000e-01 : f32
    %381 = vector.broadcast %cst_123 : f32 to vector<2x32xf32>
    %382 = arith.mulf %381, %380 : vector<2x32xf32>
    %cst_124 = arith.constant 5.000000e-01 : f32
    %383 = vector.broadcast %cst_124 : f32 to vector<2x32xf32>
    %384 = arith.addf %382, %383 : vector<2x32xf32>
    %385 = vector.extract_strided_slice %379 {offsets = [0, 32], sizes = [2, 32], strides = [1, 1]} : vector<2x128xf32> to vector<2x32xf32>
    %cst_125 = arith.constant 5.000000e-01 : f32
    %386 = vector.broadcast %cst_125 : f32 to vector<2x32xf32>
    %387 = arith.mulf %386, %385 : vector<2x32xf32>
    %cst_126 = arith.constant 5.000000e-01 : f32
    %388 = vector.broadcast %cst_126 : f32 to vector<2x32xf32>
    %389 = arith.addf %387, %388 : vector<2x32xf32>
    %390 = vector.extract_strided_slice %379 {offsets = [0, 64], sizes = [2, 32], strides = [1, 1]} : vector<2x128xf32> to vector<2x32xf32>
    %391 = vector.extract_strided_slice %379 {offsets = [0, 96], sizes = [2, 32], strides = [1, 1]} : vector<2x128xf32> to vector<2x32xf32>
    %cst_127 = arith.constant 5.000000e-01 : f32
    %392 = vector.broadcast %cst_127 : f32 to vector<2x32xf32>
    %393 = arith.mulf %392, %391 : vector<2x32xf32>
    %cst_128 = arith.constant 5.000000e-01 : f32
    %394 = vector.broadcast %cst_128 : f32 to vector<2x32xf32>
    %395 = arith.addf %393, %394 : vector<2x32xf32>
    %396 = arith.mulf %389, %342 : vector<2x32xf32>
    %397 = arith.mulf %384, %390 : vector<2x32xf32>
    %398 = arith.addf %396, %397 : vector<2x32xf32>
    %399 = math.tanh %398 : vector<2x32xf32>
    %400 = arith.mulf %395, %399 : vector<2x32xf32>
    %cst_129 = arith.constant 0.000000e+00 : f32
    %401 = vector.broadcast %cst_129 : f32 to vector<2x32xf32>
    %402 = arith.maximumf %400, %401 : vector<2x32xf32>
    %c192 = arith.constant 192 : index
    %c0_130 = arith.constant 0 : index
    %403 = vector.load %arg2[%c192, %c0_130] : memref<323x32xf32, #tpu.memory_space<vmem>>, vector<32x32xf32>
    %cst_131 = arith.constant dense<0.000000e+00> : vector<2x32xf32>
    %404 = tpu.matmul %402, %403, %cst_131 {dimension_numbers = #tpu.dot_dimension_numbers<[1], [0], [0], [1], [0, 0, 1, 1], [], []>} : vector<2x32xf32>, vector<32x32xf32>, vector<2x32xf32> -> vector<2x32xf32>
    %405 = arith.addf %349, %404 : vector<2x32xf32>
    %406 = vector.extract_strided_slice %6 {offsets = [14, 0], sizes = [2, 128], strides = [1, 1]} : vector<16x128xf32> to vector<2x128xf32>
    %cst_132 = arith.constant dense<0.000000e+00> : vector<2x128xf32>
    %407 = tpu.matmul %374, %1, %cst_132 {dimension_numbers = #tpu.dot_dimension_numbers<[1], [0], [0], [1], [0, 0, 1, 1], [], []>} : vector<2x32xf32>, vector<32x128xf32>, vector<2x128xf32> -> vector<2x128xf32>
    %408 = arith.addf %406, %407 : vector<2x128xf32>
    %409 = math.tanh %408 : vector<2x128xf32>
    %410 = vector.extract_strided_slice %409 {offsets = [0, 0], sizes = [2, 32], strides = [1, 1]} : vector<2x128xf32> to vector<2x32xf32>
    %cst_133 = arith.constant 5.000000e-01 : f32
    %411 = vector.broadcast %cst_133 : f32 to vector<2x32xf32>
    %412 = arith.mulf %411, %410 : vector<2x32xf32>
    %cst_134 = arith.constant 5.000000e-01 : f32
    %413 = vector.broadcast %cst_134 : f32 to vector<2x32xf32>
    %414 = arith.addf %412, %413 : vector<2x32xf32>
    %415 = vector.extract_strided_slice %409 {offsets = [0, 32], sizes = [2, 32], strides = [1, 1]} : vector<2x128xf32> to vector<2x32xf32>
    %cst_135 = arith.constant 5.000000e-01 : f32
    %416 = vector.broadcast %cst_135 : f32 to vector<2x32xf32>
    %417 = arith.mulf %416, %415 : vector<2x32xf32>
    %cst_136 = arith.constant 5.000000e-01 : f32
    %418 = vector.broadcast %cst_136 : f32 to vector<2x32xf32>
    %419 = arith.addf %417, %418 : vector<2x32xf32>
    %420 = vector.extract_strided_slice %409 {offsets = [0, 64], sizes = [2, 32], strides = [1, 1]} : vector<2x128xf32> to vector<2x32xf32>
    %421 = vector.extract_strided_slice %409 {offsets = [0, 96], sizes = [2, 32], strides = [1, 1]} : vector<2x128xf32> to vector<2x32xf32>
    %cst_137 = arith.constant 5.000000e-01 : f32
    %422 = vector.broadcast %cst_137 : f32 to vector<2x32xf32>
    %423 = arith.mulf %422, %421 : vector<2x32xf32>
    %cst_138 = arith.constant 5.000000e-01 : f32
    %424 = vector.broadcast %cst_138 : f32 to vector<2x32xf32>
    %425 = arith.addf %423, %424 : vector<2x32xf32>
    %426 = arith.mulf %419, %372 : vector<2x32xf32>
    %427 = arith.mulf %414, %420 : vector<2x32xf32>
    %428 = arith.addf %426, %427 : vector<2x32xf32>
    %429 = math.tanh %428 : vector<2x32xf32>
    %430 = arith.mulf %425, %429 : vector<2x32xf32>
    %431 = tpu.concatenate %430, %400 in 1 : vector<2x32xf32>, vector<2x32xf32> -> vector<2x64xf32>
    %cst_139 = arith.constant dense<0.000000e+00> : vector<2x128xf32>
    %432 = tpu.matmul %431, %7, %cst_139 {dimension_numbers = #tpu.dot_dimension_numbers<[1], [0], [0], [1], [0, 0, 1, 1], [], []>} : vector<2x64xf32>, vector<64x128xf32>, vector<2x128xf32> -> vector<2x128xf32>
    %433 = vector.broadcast %8 : vector<1x128xf32> to vector<2x128xf32>
    %434 = arith.addf %432, %433 : vector<2x128xf32>
    %435 = math.tanh %434 : vector<2x128xf32>
    %436 = vector.extract_strided_slice %435 {offsets = [0, 0], sizes = [2, 32], strides = [1, 1]} : vector<2x128xf32> to vector<2x32xf32>
    %cst_140 = arith.constant 5.000000e-01 : f32
    %437 = vector.broadcast %cst_140 : f32 to vector<2x32xf32>
    %438 = arith.mulf %437, %436 : vector<2x32xf32>
    %cst_141 = arith.constant 5.000000e-01 : f32
    %439 = vector.broadcast %cst_141 : f32 to vector<2x32xf32>
    %440 = arith.addf %438, %439 : vector<2x32xf32>
    %441 = vector.extract_strided_slice %435 {offsets = [0, 32], sizes = [2, 32], strides = [1, 1]} : vector<2x128xf32> to vector<2x32xf32>
    %cst_142 = arith.constant 5.000000e-01 : f32
    %442 = vector.broadcast %cst_142 : f32 to vector<2x32xf32>
    %443 = arith.mulf %442, %441 : vector<2x32xf32>
    %cst_143 = arith.constant 5.000000e-01 : f32
    %444 = vector.broadcast %cst_143 : f32 to vector<2x32xf32>
    %445 = arith.addf %443, %444 : vector<2x32xf32>
    %446 = vector.extract_strided_slice %435 {offsets = [0, 64], sizes = [2, 32], strides = [1, 1]} : vector<2x128xf32> to vector<2x32xf32>
    %447 = vector.extract_strided_slice %435 {offsets = [0, 96], sizes = [2, 32], strides = [1, 1]} : vector<2x128xf32> to vector<2x32xf32>
    %cst_144 = arith.constant 5.000000e-01 : f32
    %448 = vector.broadcast %cst_144 : f32 to vector<2x32xf32>
    %449 = arith.mulf %448, %447 : vector<2x32xf32>
    %cst_145 = arith.constant 5.000000e-01 : f32
    %450 = vector.broadcast %cst_145 : f32 to vector<2x32xf32>
    %451 = arith.addf %449, %450 : vector<2x32xf32>
    %452 = arith.mulf %445, %398 : vector<2x32xf32>
    %453 = arith.mulf %440, %446 : vector<2x32xf32>
    %454 = arith.addf %452, %453 : vector<2x32xf32>
    %455 = math.tanh %454 : vector<2x32xf32>
    %456 = arith.mulf %451, %455 : vector<2x32xf32>
    %cst_146 = arith.constant 0.000000e+00 : f32
    %457 = vector.broadcast %cst_146 : f32 to vector<2x32xf32>
    %458 = arith.maximumf %456, %457 : vector<2x32xf32>
    %c224 = arith.constant 224 : index
    %c0_147 = arith.constant 0 : index
    %459 = vector.load %arg2[%c224, %c0_147] : memref<323x32xf32, #tpu.memory_space<vmem>>, vector<32x32xf32>
    %cst_148 = arith.constant dense<0.000000e+00> : vector<2x32xf32>
    %460 = tpu.matmul %458, %459, %cst_148 {dimension_numbers = #tpu.dot_dimension_numbers<[1], [0], [0], [1], [0, 0, 1, 1], [], []>} : vector<2x32xf32>, vector<32x32xf32>, vector<2x32xf32> -> vector<2x32xf32>
    %461 = arith.addf %405, %460 : vector<2x32xf32>
    %c320 = arith.constant 320 : index
    %c0_149 = arith.constant 0 : index
    %462 = vector.load %arg2[%c320, %c0_149] : memref<323x32xf32, #tpu.memory_space<vmem>>, vector<1x32xf32>
    %c321 = arith.constant 321 : index
    %c0_150 = arith.constant 0 : index
    %463 = vector.load %arg2[%c321, %c0_150] : memref<323x32xf32, #tpu.memory_space<vmem>>, vector<1x32xf32>
    %c322 = arith.constant 322 : index
    %c0_151 = arith.constant 0 : index
    %464 = vector.load %arg2[%c322, %c0_151] : memref<323x32xf32, #tpu.memory_space<vmem>>, vector<1x32xf32>
    %465 = vector.broadcast %462 : vector<1x32xf32> to vector<2x32xf32>
    %466 = arith.addf %461, %465 : vector<2x32xf32>
    %cst_152 = arith.constant 0.000000e+00 : f32
    %467 = vector.broadcast %cst_152 : f32 to vector<2x32xf32>
    %468 = arith.maximumf %466, %467 : vector<2x32xf32>
    %c256 = arith.constant 256 : index
    %c0_153 = arith.constant 0 : index
    %469 = vector.load %arg2[%c256, %c0_153] : memref<323x32xf32, #tpu.memory_space<vmem>>, vector<32x32xf32>
    %cst_154 = arith.constant dense<0.000000e+00> : vector<2x32xf32>
    %470 = tpu.matmul %468, %469, %cst_154 {dimension_numbers = #tpu.dot_dimension_numbers<[1], [0], [0], [1], [0, 0, 1, 1], [], []>} : vector<2x32xf32>, vector<32x32xf32>, vector<2x32xf32> -> vector<2x32xf32>
    %471 = vector.broadcast %463 : vector<1x32xf32> to vector<2x32xf32>
    %472 = arith.addf %470, %471 : vector<2x32xf32>
    %cst_155 = arith.constant 0.000000e+00 : f32
    %473 = vector.broadcast %cst_155 : f32 to vector<2x32xf32>
    %474 = arith.maximumf %472, %473 : vector<2x32xf32>
    %c288 = arith.constant 288 : index
    %c0_156 = arith.constant 0 : index
    %475 = vector.load %arg2[%c288, %c0_156] : memref<323x32xf32, #tpu.memory_space<vmem>>, vector<32x32xf32>
    %cst_157 = arith.constant dense<0.000000e+00> : vector<2x32xf32>
    %476 = tpu.matmul %474, %475, %cst_157 {dimension_numbers = #tpu.dot_dimension_numbers<[1], [0], [0], [1], [0, 0, 1, 1], [], []>} : vector<2x32xf32>, vector<32x32xf32>, vector<2x32xf32> -> vector<2x32xf32>
    %477 = vector.broadcast %464 : vector<1x32xf32> to vector<2x32xf32>
    %478 = arith.addf %476, %477 : vector<2x32xf32>
    %479 = vector.extract_strided_slice %478 {offsets = [0, 0], sizes = [2, 1], strides = [1, 1]} : vector<2x32xf32> to vector<2x1xf32>
    %c0_158 = arith.constant 0 : index
    %c0_159 = arith.constant 0 : index
    %480 = vector.load %arg3[%c0_158, %c0_159] : memref<2x1xf32, #tpu.memory_space<vmem>>, vector<2x1xf32>
    tpu.vector_store %arg3[%c0_158, %c0_159], %479 {strides = array<i32>} : memref<2x1xf32, #tpu.memory_space<vmem>>, vector<2x1xf32>,
    return
  }
}

</mosaic_0001>

<bundles_post_ra>
// kernel: lstm_model_forward.1
= control target key start
LH: loop header
LB: loop body
LE: loop exit
PB: predicated region body
PF: predicated region fallthrough
CT: control target
= control target key end

     0   :  { %vm33_vm0 = vcmask 1043456   ;;  %vm26_vm1 = vcmask 31744   ;;  %v3401_v0 = vmov 0.0|0.0   ;;  %vm3402_vm2 = vmmov 0   ;;  %s3404_s27 = smov 64   ;;  %s3405_s28 = smov 32   ;;  %s3998_s1 = inlined_call_operand.vmem [shape: f32[102,128], index: 1, kind: input, shape index: {}]   ;;  %s3999_s0 = inlined_call_operand.vmem [shape: f32[16,4], index: 0, kind: input, shape index: {}]   ;;  %s4000_s2 = inlined_call_operand.vmem [shape: f32[323,32], index: 2, kind: input, shape index: {}]   ;;  %s4001_s3 = inlined_call_operand.vmem [shape: f32[2,1], index: 3, kind: output, shape index: {}]  }
   0x1   :  { %3127 = vmatprep.subr.bf16.mxu1 %v3401_v0  ;;  %v15_v1 = vld [vmem:[%s3998_s1 + $0x4] sm:$0xff]  ;;  %v16_v2 = vld [vmem:[%s3998_s1 + $0xc] sm:$0xff]  ;;  %v14_v3 = vld [vmem:[%s3998_s1] sm:$0xf]  ;;  %v3403_v8 = vmov 0.0   ;;  %vm121_vm3 = vcmask 261120  }
   0x2   :  { %v3436_v4 = vpack.c.bf16 %v16_v2, %v15_v1  ;;  %2772 = vmatprep.subr.msk.mxu0 %vm33_vm0, %v14_v3  ;;  %v20_v5 = vld [vmem:[%s3999_s0] sm:$0xff]  ;;  %v21_v6 = vld [vmem:[%s3999_s0 + $0x8] sm:$0xff]  ;;  %v17_v7 = vld [vmem:[%s3998_s1 + $0x14] sm:$0xff]  ;;  %2785 = vmatprep.mubr.msk.f32.mxu1 %vm3402_vm2, %v3403_v8  ;;  %vm225_vm4 = vcmask 523264   ;;  %vm2568_vm5 = vcmask 1024  }
   0x3   :  { %2773 = vmatpush3.msk.msra.mxu0 %vm33_vm0, %v14_v3  ;;  %2774 = vmatprep.mubr.msk.f32.mxu0 %vm26_vm1, %v20_v5  ;;  %v18_v9 = vld [vmem:[%s3998_s1 + $0x1c] sm:$0xff]  ;;  %v2574_v11 = vld [vmem:[%s3998_s1 + $0x24] ss:$0 sm:$0xff]  ;;  %v112_v27 = vld [vmem:[%s3998_s1 + $0x25] sm:$0xff] }
   0x4   :  { %3129 = vmatpush3.bf16.msra.mxu1 %v3436_v4  ;;  %2775 = vmatmul.mubr.msk.f32.vlgmr.msra.gmra.mrb[0].mxu0 %vm26_vm1, %v21_v6  ;;  %v3457_v10 = vpack.c.bf16 %v18_v9, %v17_v7  ;;  %v113_v28 = vld [vmem:[%s3998_s1 + $0x2d] sm:$0xff]  ;;  %v114_v29 = vld [vmem:[%s3998_s1 + $0x35] sm:$0xff]  ;;  %v115_v31 = vld [vmem:[%s3998_s1 + $0x3d] sm:$0xff] }
   0x5   :  { %3130 = vmatprep.subr.bf16.mxu1 %v3401_v0  ;;  %3133 = vmatprep.subr.bf16.mxu0 %v3401_v0  ;;  %v3494_v30 = vpack.c.bf16 %v113_v28, %v112_v27  ;;  %v3500_v32 = vpack.c.bf16 %v115_v31, %v114_v29  ;;  %v116_v33 = vld [vmem:[%s3998_s1 + $0x45] sm:$0xff]  ;;  %v117_v34 = vld [vmem:[%s3998_s1 + $0x4d] sm:$0xff]  ;;  %v118_v36 = vld [vmem:[%s3998_s1 + $0x55] sm:$0xff] }
   0x6   :  { %2804 = vmatprep.mubr.msk.f32.mxu0 %vm3402_vm2, %v3403_v8  ;;  %v3510_v35 = vpack.c.bf16 %v117_v34, %v116_v33  ;;  %v119_v37 = vld [vmem:[%s3998_s1 + $0x5d] sm:$0xff]  ;;  %v3545_v44 = vld [vmem:[%s3998_s1 + $0x65] ss:$0 sm:$0xff] }
   0x7   :  { %3135 = vmatpush3.bf16.msra.mxu0 %v3494_v30  ;;  %v3521_v39 = vpack.c.bf16 %v119_v37, %v118_v36 }
   0x8   :  { %3132 = vmatpush3.bf16.msra.mxu1 %v3457_v10  ;;  %3136 = vmatprep.subr.bf16.mxu0 %v3401_v0 }
   0x9   :  { %3145 = vmatprep.subr.bf16.mxu1 %v3401_v0 }
   0xb   :  { %2786 = vmatmul.mubr.f32.vlgmr.msra.gmra.mrb[0].mxu1 %v3403_v8  ;;  %3138 = vmatpush3.bf16.msra.mxu0 %v3500_v32 }
   0xc   :  { %3147 = vmatpush3.bf16.msra.mxu1 %v3436_v4  ;;  %2815 = vmatprep.mubr.msk.f32.mxu1 %vm3402_vm2, %v3403_v8 }
   0xd   :  { %3148 = vmatprep.subr.bf16.mxu1 %v3401_v0  ;;  %3139 = vmatprep.subr.bf16.mxu0 %v3401_v0 }
   0xf   :  { %3141 = vmatpush3.bf16.msra.mxu0 %v3510_v35 }
  0x10   :  { %3150 = vmatpush3.bf16.msra.mxu1 %v3457_v10  ;;  %3142 = vmatprep.subr.bf16.mxu0 %v3401_v0 }
  0x11   :  { %3151 = vmatprep.subr.bf16.mxu1 %v3401_v0 }
  0x13   :  { %3144 = vmatpush3.bf16.msra.mxu0 %v3521_v39 }
  0x14   :  { %3163 = vmatprep.subr.bf16.mxu0 %v3401_v0 }
  0xd7   :  { %v2776_v12 = vpop.f32.mrb[0].mxu0 }
  0xd8   :  { %v3475_v13 = vadd.f32 %v2776_v12, %v2574_v11  ;;  %v103_v14 = vpop.f32.mrb[1].mxu0 }
  0xd9   :  { %v3477_v15 = vadd.f32 %v2574_v11, %v103_v14 }
  0xde   :  { %v191_v16 = vpop.f32.mrb[0].mxu1 }
  0xdf   :  { %v195_v17 = vadd.f32 %v191_v16, %v3477_v15  ;;  %v2787_v18 = vpop.f32.mrb[1].mxu1 }
  0xe1   :  { %3336 = vtanh.f32 %v195_v17 }
  0xeb   :  { %v3337_v19 = vpop.eup %3336 }
  0xec   :  { %201 = vrot.lane.b32.xlu0 %v3337_v19, %s3404_s27  ;;  %v197_v20 = vmul.f32 0.5, %v3337_v19 }
  0xee   :  { %v198_v21 = vadd.f32 0.5, %v197_v20 }
  0xf0   :  { %v199_v24 = vmul.f32 0.0, %v198_v21 }
 0x15e   :  { %v202_v22 = vpop.permute.xlu0 %201 }
 0x15f   :  { %v204_v23 = vmul.f32 %v202_v22, %v198_v21 }
 0x161   :  { %206 = vrot.lane.b32.xlu0 %v204_v23, %s3405_s28 }
 0x1d3   :  { %v207_v25 = vpop.permute.xlu0 %206 }
 0x1d4   :  { %v3482_v26 = vadd.f32 %v207_v25, %v199_v24 }
 0x1d6   :  { %3338 = vtanh.f32 %v3482_v26  ;;  %v404_v62 = vrot.slane %v3482_v26, 6 }
 0x1e0   :  { %v3339_v38 = vpop.eup %3338 }
 0x1e1   :  { %212 = vrot.lane.b32.xlu1 %v3339_v38, %s3404_s27 }
 0x253   :  { %v213_v40 = vpop.permute.xlu1 %212 }
 0x254   :  { %v215_v41 = vmul.f32 %v213_v40, %v198_v21 }
 0x256   :  { %217 = vrot.lane.b32.xlu1 %v215_v41, %s3405_s28 }
 0x2c8   :  { %v218_v42 = vpop.permute.xlu1 %217 }
 0x2c9   :  { %v220_v43 = vsel %vm121_vm3, %v218_v42, 0.0  ;;  %2816 = vmatmul.mubr.msk.f32.vlgmr.msra.gmra.mrb[2].mxu1 %vm121_vm3, %v218_v42 }
 0x2ca   :  { %2805 = vmatmul.mubr.msk.f32.vlgmr.msra.gmra.mrb[2].mxu0 %vm225_vm4, %v220_v43  ;;  %3153 = vmatpush3.bf16.msra.mxu1 %v3494_v30 }
 0x2cb   :  { %3154 = vmatprep.subr.bf16.mxu1 %v3401_v0  ;;  %2834 = vmatprep.mubr.msk.f32.mxu1 %vm3402_vm2, %v3403_v8 }
 0x2cc   :  { %2845 = vmatprep.mubr.msk.f32.mxu0 %vm3402_vm2, %v3403_v8 }
 0x2ce   :  { %3156 = vmatpush3.bf16.msra.mxu1 %v3500_v32 }
 0x2cf   :  { %3157 = vmatprep.subr.bf16.mxu1 %v3401_v0 }
 0x2d2   :  { %3159 = vmatpush3.bf16.msra.mxu1 %v3510_v35 }
 0x2d3   :  { %3160 = vmatprep.subr.bf16.mxu1 %v3401_v0 }
 0x2d6   :  { %3162 = vmatpush3.bf16.msra.mxu1 %v3521_v39 }
 0x2d7   :  { %3175 = vmatprep.subr.bf16.mxu1 %v3401_v0 }
 0x39c   :  { %v392_v45 = vpop.f32.mrb[2].mxu1 }
 0x39d   :  { %v397_v46 = vrot.slane %v392_v45, 6  ;;  %v295_v47 = vpop.f32.mrb[2].mxu0  ;;  %v2817_v48 = vpop.f32.mrb[3].mxu1 }
 0x39e   :  { %v296_v49 = vadd.f32 %v3545_v44, %v295_v47  ;;  %v2806_v50 = vpop.f32.mrb[3].mxu0 }
 0x39f   :  { %v399_v51 = vadd.f32 %v397_v46, %v3477_v15 }
 0x3a0   :  { %3340 = vtanh.f32 %v296_v49 }
 0x3a1   :  { %3342 = vtanh.f32 %v399_v51 }
 0x3aa   :  { %v3341_v52 = vpop.eup %3340 }
 0x3ab   :  { %v3343_v53 = vpop.eup %3342  ;;  %304 = vrot.lane.b32.xlu0 %v3341_v52, %s3404_s27  ;;  %v300_v54 = vmul.f32 0.5, %v3341_v52 }
 0x3ac   :  { %408 = vrot.lane.b32.xlu1 %v3343_v53, %s3404_s27  ;;  %v401_v55 = vmul.f32 0.5, %v3343_v53 }
 0x3ad   :  { %v301_v56 = vadd.f32 0.5, %v300_v54  ;;  %v528_v54 = vld [vmem:[%s4000_s2 + $0x20] sm:$0xff] }
 0x3ae   :  { %v402_v58 = vadd.f32 0.5, %v401_v55  ;;  %v529_v55 = vld [vmem:[%s4000_s2 + $0x28] sm:$0xff] }
 0x3af   :  { %v302_v63 = vmul.f32 0.0, %v301_v56 }
 0x3b0   :  { %v406_v2 = vmul.f32 %v404_v62, %v402_v58 }
 0x41d   :  { %v305_v57 = vpop.permute.xlu0 %304 }
 0x41e   :  { %v307_v59 = vmul.f32 %v305_v57, %v301_v56  ;;  %v409_v60 = vpop.permute.xlu1 %408  ;;  %v3164_v57 = vpack.c.bf16 %v529_v55, %v528_v54 }
 0x41f   :  { %v411_v61 = vmul.f32 %v409_v60, %v402_v58 }
 0x420   :  { %309 = vrot.lane.b32.xlu0 %v307_v59, %s3405_s28  ;;  %3165 = vmatpush3.bf16.msra.mxu0 %v3164_v57 }
 0x421   :  { %413 = vrot.lane.b32.xlu1 %v411_v61, %s3405_s28  ;;  %3166 = vmatprep.subr.bf16.mxu0 %v3401_v0 }
 0x492   :  { %v310_v1 = vpop.permute.xlu0 %309 }
 0x493   :  { %v312_v3 = vadd.f32 %v310_v1, %v302_v63  ;;  %v414_v5 = vpop.permute.xlu1 %413 }
 0x494   :  { %v416_v6 = vadd.f32 %v414_v5, %v406_v2 }
 0x495   :  { %3344 = vtanh.f32 %v312_v3 }
 0x496   :  { %3346 = vtanh.f32 %v416_v6  ;;  %v765_v49 = vrot.slane %v416_v6, 6  ;;  %v320_v6 = vld [vmem:[%s4000_s2] sm:$0xff] }
 0x49f   :  { %v3345_v7 = vpop.eup %3344 }
 0x4a0   :  { %v3347_v9 = vpop.eup %3346  ;;  %315 = vrot.lane.b32.xlu0 %v3345_v7, %s3404_s27  ;;  %v321_v7 = vld [vmem:[%s4000_s2 + $0x8] sm:$0xff] }
 0x4a1   :  { %419 = vrot.lane.b32.xlu1 %v3347_v9, %s3404_s27  ;;  %v3170_v9 = vpack.c.bf16 %v321_v7, %v320_v6 }
 0x512   :  { %v316_v11 = vpop.permute.xlu0 %315 }
 0x513   :  { %v3556_v12 = vmul.f32 %v316_v11, %v301_v56  ;;  %v420_v14 = vpop.permute.xlu1 %419  ;;  %v530_v56 = vld [vmem:[%s4000_s2 + $0x30] sm:$0xff] }
 0x514   :  { %v422_v16 = vmul.f32 %v420_v14, %v402_v58  ;;  %v531_v58 = vld [vmem:[%s4000_s2 + $0x38] sm:$0xff]  ;;  %v322_v11 = vld [vmem:[%s4000_s2 + $0x10] sm:$0xff] }
 0x515   :  { %v428_v17 = vrot.slane %v3556_v12, 6  ;;  %v3167_v59 = vpack.c.bf16 %v531_v58, %v530_v56  ;;  %v319_v61 = vmax.f32 %v3556_v12, 0.0  ;;  %v323_v12 = vld [vmem:[%s4000_s2 + $0x18] sm:$0xff] }
 0x516   :  { %424 = vrot.lane.b32.xlu0 %v422_v16, %s3405_s28  ;;  %v682_v18 = vrot.slane %v422_v16, 2  ;;  %v3173_v16 = vpack.c.bf16 %v323_v12, %v322_v11 }
 0x517   :  { %429 = vrot.lane.b32.xlu1 %v428_v17, %s3404_s27  ;;  %3168 = vmatpush3.bf16.msra.mxu0 %v3167_v59 }
 0x518   :  { %3169 = vmatprep.subr.bf16.mxu0 %v3401_v0 }
 0x51a   :  { %683 = vrot.lane.b32.xlu0 %v682_v18, %s3405_s28 }
 0x588   :  { %v425_v19 = vpop.permute.xlu0 %424 }
 0x589   :  { %v430_v20 = vpop.permute.xlu1 %429 }
 0x58a   :  { %v432_v21 = vsel %vm121_vm3, %v425_v19, %v430_v20 }
 0x58b   :  { %v434_v22 = vrot.slane %v432_v21, 2 }
 0x58c   :  { %v684_v23 = vpop.permute.xlu0 %683 }
 0x58d   :  { %2835 = vmatmul.mubr.msk.f32.vlgmr.msra.gmra.mrb[4].mxu1 %vm225_vm4, %v434_v22 }
 0x58e   :  { %3177 = vmatpush3.bf16.msra.mxu1 %v3436_v4  ;;  %2867 = vmatprep.mubr.msk.f32.mxu1 %vm3402_vm2, %v3403_v8 }
 0x58f   :  { %3178 = vmatprep.subr.bf16.mxu1 %v3401_v0 }
 0x592   :  { %3180 = vmatpush3.bf16.msra.mxu1 %v3457_v10 }
 0x593   :  { %3193 = vmatprep.subr.bf16.mxu1 %v3401_v0 }
 0x595   :  { %2868 = vmatmul.mubr.msk.f32.vlgmr.msra.gmra.mrb[6].mxu1 %vm121_vm3, %v684_v23 }
 0x596   :  { %2897 = vmatprep.mubr.msk.f32.mxu1 %vm3402_vm2, %v3403_v8 }
 0x660   :  { %v503_v24 = vpop.f32.mrb[4].mxu1 }
 0x661   :  { %v504_v25 = vadd.f32 %v3545_v44, %v503_v24  ;;  %v2836_v26 = vpop.f32.mrb[5].mxu1 }
 0x663   :  { %3348 = vtanh.f32 %v504_v25 }
 0x668   :  { %v753_v27 = vpop.f32.mrb[6].mxu1 }
 0x669   :  { %v758_v28 = vrot.slane %v753_v27, 4  ;;  %v2869_v29 = vpop.f32.mrb[7].mxu1 }
 0x66b   :  { %v760_v31 = vadd.f32 %v758_v28, %v3477_v15 }
 0x66d   :  { %v3349_v33 = vpop.eup %3348  ;;  %3350 = vtanh.f32 %v760_v31 }
 0x66e   :  { %512 = vrot.lane.b32.xlu1 %v3349_v33, %s3404_s27  ;;  %v508_v36 = vmul.f32 0.5, %v3349_v33 }
 0x670   :  { %v509_v37 = vadd.f32 0.5, %v508_v36 }
 0x672   :  { %v510_v46 = vmul.f32 %v509_v37, %v312_v3 }
 0x677   :  { %v3351_v34 = vpop.eup %3350 }
 0x678   :  { %769 = vrot.lane.b32.xlu0 %v3351_v34, %s3404_s27  ;;  %v762_v41 = vmul.f32 0.5, %v3351_v34 }
 0x67a   :  { %v763_v42 = vadd.f32 0.5, %v762_v41 }
 0x67c   :  { %v767_v50 = vmul.f32 %v765_v49, %v763_v42 }
 0x6e0   :  { %v513_v38 = vpop.permute.xlu1 %512 }
 0x6e1   :  { %v515_v40 = vmul.f32 %v513_v38, %v509_v37 }
 0x6e3   :  { %517 = vrot.lane.b32.xlu1 %v515_v40, %s3405_s28 }
 0x6ea   :  { %v770_v43 = vpop.permute.xlu0 %769 }
 0x6eb   :  { %v772_v45 = vmul.f32 %v770_v43, %v763_v42  ;;  %v890_v43 = vld [vmem:[%s4000_s2 + $0x48] sm:$0xff] }
 0x6ed   :  { %774 = vrot.lane.b32.xlu0 %v772_v45, %s3405_s28  ;;  %v891_v45 = vld [vmem:[%s4000_s2 + $0x50] sm:$0xff] }
 0x755   :  { %v518_v47 = vpop.permute.xlu1 %517 }
 0x756   :  { %v3579_v48 = vadd.f32 %v518_v47, %v510_v46  ;;  %v892_v47 = vld [vmem:[%s4000_s2 + $0x58] sm:$0xff] }
 0x758   :  { %3352 = vtanh.f32 %v3579_v48 }
 0x75f   :  { %v775_v51 = vpop.permute.xlu0 %774 }
 0x760   :  { %v3582_v52 = vadd.f32 %v775_v51, %v767_v50 }
 0x762   :  { %v3353_v53 = vpop.eup %3352  ;;  %3354 = vtanh.f32 %v3582_v52  ;;  %v1052_v7 = vrot.slane %v3582_v52, 6 }
 0x763   :  { %523 = vrot.lane.b32.xlu1 %v3353_v53, %s3404_s27 }
 0x76c   :  { %v3355_v60 = vpop.eup %3354 }
 0x76d   :  { %780 = vrot.lane.b32.xlu0 %v3355_v60, %s3404_s27 }
 0x771   :  { %608 = vrot.lane.b32.xlu0 %v319_v61, %s3405_s28 }
 0x7d5   :  { %v524_v62 = vpop.permute.xlu1 %523 }
 0x7d6   :  { %v526_v63 = vmul.f32 %v524_v62, %v509_v37 }
 0x7d8   :  { %v527_v1 = vmax.f32 %v526_v63, 0.0  ;;  %v789_v2 = vrot.slane %v526_v63, 4 }
 0x7da   :  { %533 = vrot.lane.b32.xlu1 %v527_v1, %s3405_s28  ;;  %790 = vrot.lane.b32.xlu0 %v789_v2, %s3404_s27 }
 0x7df   :  { %v781_v3 = vpop.permute.xlu0 %780 }
 0x7e0   :  { %v3605_v5 = vmul.f32 %v781_v3, %v763_v42  ;;  %v889_v42 = vld [vmem:[%s4000_s2 + $0x40] sm:$0xff] }
 0x7e1   :  { %v3194_v46 = vpack.c.bf16 %v890_v43, %v889_v42 }
 0x7e2   :  { %785 = vrot.lane.b32.xlu1 %v3605_v5, %s3405_s28  ;;  %v969_v50 = vrot.slane %v3605_v5, 4 }
 0x7e3   :  { %v609_v17 = vpop.permute.xlu0 %608  ;;  %3195 = vmatpush3.bf16.msra.mxu1 %v3194_v46 }
 0x7e4   :  { %3196 = vmatprep.subr.bf16.mxu1 %v3401_v0 }
 0x84c   :  { %v534_v14 = vpop.permute.xlu1 %533  ;;  %v791_v19 = vpop.permute.xlu0 %790 }
 0x84d   :  { %2846 = vmatmul.mubr.msk.f32.vlgmr.msra.gmra.mrb[4].mxu0 %vm121_vm3, %v534_v14 }
 0x84e   :  { %3171 = vmatpush3.bf16.msra.mxu0 %v3170_v9  ;;  %2856 = vmatprep.mubr.msk.f32.mxu0 %vm3402_vm2, %v3403_v8 }
 0x84f   :  { %3172 = vmatprep.subr.bf16.mxu0 %v3401_v0 }
 0x852   :  { %3174 = vmatpush3.bf16.msra.mxu0 %v3173_v16 }
 0x853   :  { %3181 = vmatprep.subr.bf16.mxu0 %v3401_v0 }
 0x854   :  { %v786_v18 = vpop.permute.xlu1 %785 }
 0x855   :  { %2857 = vmatmul.mubr.msk.f32.vlgmr.msra.gmra.mrb[6].mxu0 %vm121_vm3, %v609_v17  ;;  %v793_v20 = vsel %vm121_vm3, %v786_v18, %v791_v19 }
 0x856   :  { %3183 = vmatpush3.bf16.msra.mxu0 %v3494_v30  ;;  %2886 = vmatprep.mubr.msk.f32.mxu0 %vm3402_vm2, %v3403_v8  ;;  %v795_v21 = vrot.slane %v793_v20, 4 }
 0x857   :  { %3184 = vmatprep.subr.bf16.mxu0 %v3401_v0 }
 0x85a   :  { %3186 = vmatpush3.bf16.msra.mxu0 %v3500_v32 }
 0x85b   :  { %3187 = vmatprep.subr.bf16.mxu0 %v3401_v0 }
 0x85e   :  { %3189 = vmatpush3.bf16.msra.mxu0 %v3510_v35 }
 0x85f   :  { %3190 = vmatprep.subr.bf16.mxu0 %v3401_v0 }
 0x862   :  { %3192 = vmatpush3.bf16.msra.mxu0 %v3521_v39 }
 0x863   :  { %3205 = vmatprep.subr.bf16.mxu0 %v3401_v0 }
 0x865   :  { %2887 = vmatmul.mubr.msk.f32.vlgmr.msra.gmra.mrb[8].mxu0 %vm225_vm4, %v795_v21 }
 0x866   :  { %3207 = vmatpush3.bf16.msra.mxu0 %v3494_v30  ;;  %2927 = vmatprep.mubr.msk.f32.mxu0 %vm3402_vm2, %v3403_v8 }
 0x867   :  { %3208 = vmatprep.subr.bf16.mxu0 %v3401_v0 }
 0x86a   :  { %3210 = vmatpush3.bf16.msra.mxu0 %v3500_v32 }
 0x86b   :  { %3211 = vmatprep.subr.bf16.mxu0 %v3401_v0 }
 0x86e   :  { %3213 = vmatpush3.bf16.msra.mxu0 %v3510_v35 }
 0x86f   :  { %3214 = vmatprep.subr.bf16.mxu0 %v3401_v0 }
 0x872   :  { %3216 = vmatpush3.bf16.msra.mxu0 %v3521_v39 }
 0x873   :  { %3229 = vmatprep.subr.bf16.mxu0 %v3401_v0 }
 0x920   :  { %v603_v22 = vpop.f32.mrb[4].mxu0 }
 0x921   :  { %v2847_v23 = vpop.f32.mrb[5].mxu0 }
 0x928   :  { %v678_v24 = vpop.f32.mrb[6].mxu0 }
 0x929   :  { %v679_v25 = vadd.f32 %v678_v24, %v603_v22  ;;  %v2858_v26 = vpop.f32.mrb[7].mxu0 }
 0x938   :  { %v864_v27 = vpop.f32.mrb[8].mxu0 }
 0x939   :  { %v865_v28 = vadd.f32 %v3545_v44, %v864_v27  ;;  %v2888_v29 = vpop.f32.mrb[9].mxu0 }
 0x93b   :  { %3356 = vtanh.f32 %v865_v28 }
 0x945   :  { %v3357_v31 = vpop.eup %3356 }
 0x946   :  { %873 = vrot.lane.b32.xlu1 %v3357_v31, %s3404_s27  ;;  %v869_v33 = vmul.f32 0.5, %v3357_v31 }
 0x948   :  { %v870_v34 = vadd.f32 0.5, %v869_v33 }
 0x94a   :  { %v871_v38 = vmul.f32 %v870_v34, %v3579_v48  ;;  %v3197_v48 = vpack.c.bf16 %v892_v47, %v891_v45 }
 0x94c   :  { %3198 = vmatpush3.bf16.msra.mxu1 %v3197_v48 }
 0x94d   :  { %3199 = vmatprep.subr.bf16.mxu1 %v3401_v0 }
 0x9b8   :  { %v874_v36 = vpop.permute.xlu1 %873 }
 0x9b9   :  { %v876_v37 = vmul.f32 %v874_v36, %v870_v34  ;;  %v1177_v36 = vld [vmem:[%s4000_s2 + $0x68] sm:$0xff] }
 0x9bb   :  { %878 = vrot.lane.b32.xlu0 %v876_v37, %s3405_s28  ;;  %v1178_v37 = vld [vmem:[%s4000_s2 + $0x70] sm:$0xff] }
 0xa2d   :  { %v879_v40 = vpop.permute.xlu0 %878 }
 0xa2e   :  { %v3653_v41 = vadd.f32 %v879_v40, %v871_v38  ;;  %v1179_v40 = vld [vmem:[%s4000_s2 + $0x78] sm:$0xff] }
 0xa30   :  { %3358 = vtanh.f32 %v3653_v41 }
 0xa3a   :  { %v3359_v49 = vpop.eup %3358 }
 0xa3b   :  { %884 = vrot.lane.b32.xlu1 %v3359_v49, %s3404_s27 }
 0xa3f   :  { %970 = vrot.lane.b32.xlu1 %v969_v50, %s3405_s28 }
 0xaad   :  { %v885_v51 = vpop.permute.xlu1 %884 }
 0xaae   :  { %v887_v53 = vmul.f32 %v885_v51, %v870_v34  ;;  %v1176_v34 = vld [vmem:[%s4000_s2 + $0x60] sm:$0xff] }
 0xaaf   :  { %v3218_v38 = vpack.c.bf16 %v1177_v36, %v1176_v34 }
 0xab0   :  { %v888_v54 = vmax.f32 %v887_v53, 0.0 }
 0xab1   :  { %v971_v56 = vpop.permute.xlu1 %970 }
 0xab2   :  { %894 = vrot.lane.b32.xlu0 %v888_v54, %s3405_s28 }
 0xb24   :  { %v895_v55 = vpop.permute.xlu0 %894 }
 0xb25   :  { %2898 = vmatmul.mubr.msk.f32.vlgmr.msra.gmra.mrb[8].mxu1 %vm121_vm3, %v895_v55 }
 0xb26   :  { %3201 = vmatpush3.bf16.msra.mxu1 %v3436_v4  ;;  %2908 = vmatprep.mubr.msk.f32.mxu1 %vm3402_vm2, %v3403_v8 }
 0xb27   :  { %3202 = vmatprep.subr.bf16.mxu1 %v3401_v0 }
 0xb2a   :  { %3204 = vmatpush3.bf16.msra.mxu1 %v3457_v10 }
 0xb2b   :  { %3217 = vmatprep.subr.bf16.mxu1 %v3401_v0 }
 0xb2d   :  { %2909 = vmatmul.mubr.msk.f32.vlgmr.msra.gmra.mrb[10].mxu1 %vm121_vm3, %v971_v56 }
 0xb2e   :  { %2938 = vmatprep.mubr.msk.f32.mxu1 %vm3402_vm2, %v3403_v8  ;;  %3219 = vmatpush3.bf16.msra.mxu1 %v3218_v38 }
 0xb2f   :  { %3220 = vmatprep.subr.bf16.mxu1 %v3401_v0 }
 0xbf8   :  { %v964_v57 = vpop.f32.mrb[8].mxu1 }
 0xbf9   :  { %v3684_v58 = vadd.f32 %v964_v57, %v679_v25  ;;  %v2899_v59 = vpop.f32.mrb[9].mxu1 }
 0xc00   :  { %v1040_v60 = vpop.f32.mrb[10].mxu1 }
 0xc01   :  { %v1045_v61 = vrot.slane %v1040_v60, 2  ;;  %v2910_v62 = vpop.f32.mrb[11].mxu1 }
 0xc03   :  { %v1047_v63 = vadd.f32 %v1045_v61, %v3477_v15  ;;  %v1076_v15 = vrot.slane %v887_v53, 2 }
 0xc05   :  { %3360 = vtanh.f32 %v1047_v63 }
 0xc0f   :  { %v3361_v1 = vpop.eup %3360 }
 0xc10   :  { %1056 = vrot.lane.b32.xlu0 %v3361_v1, %s3404_s27  ;;  %v1049_v2 = vmul.f32 0.5, %v3361_v1 }
 0xc12   :  { %v1050_v3 = vadd.f32 0.5, %v1049_v2 }
 0xc14   :  { %v1054_v9 = vmul.f32 %v1052_v7, %v1050_v3 }
 0xc82   :  { %v1057_v5 = vpop.permute.xlu0 %1056 }
 0xc83   :  { %v1059_v6 = vmul.f32 %v1057_v5, %v1050_v3 }
 0xc85   :  { %1061 = vrot.lane.b32.xlu1 %v1059_v6, %s3405_s28 }
 0xcf7   :  { %v1062_v11 = vpop.permute.xlu1 %1061 }
 0xcf8   :  { %v3690_v12 = vadd.f32 %v1062_v11, %v1054_v9 }
 0xcfa   :  { %3362 = vtanh.f32 %v3690_v12  ;;  %v1336_v63 = vrot.slane %v3690_v12, 6 }
 0xd04   :  { %v3363_v14 = vpop.eup %3362 }
 0xd05   :  { %1067 = vrot.lane.b32.xlu0 %v3363_v14, %s3404_s27 }
 0xd09   :  { %1077 = vrot.lane.b32.xlu0 %v1076_v15, %s3404_s27 }
 0xd77   :  { %v1068_v16 = vpop.permute.xlu0 %1067 }
 0xd78   :  { %v1070_v17 = vmul.f32 %v1068_v16, %v1050_v3 }
 0xd7a   :  { %1072 = vrot.lane.b32.xlu1 %v1070_v17, %s3405_s28  ;;  %v1256_v43 = vrot.slane %v1070_v17, 6 }
 0xd7b   :  { %v1078_v18 = vpop.permute.xlu0 %1077 }
 0xdec   :  { %v1073_v19 = vpop.permute.xlu1 %1072 }
 0xded   :  { %v1080_v52 = vsel %vm121_vm3, %v1073_v19, %v1078_v18 }
 0xdee   :  { %v1082_v20 = vrot.slane %v1080_v52, 6 }
 0xdf0   :  { %2928 = vmatmul.mubr.msk.f32.vlgmr.msra.gmra.mrb[10].mxu0 %vm225_vm4, %v1082_v20 }
 0xdf1   :  { %3231 = vmatpush3.bf16.msra.mxu0 %v3494_v30  ;;  %2968 = vmatprep.mubr.msk.f32.mxu0 %vm3402_vm2, %v3403_v8 }
 0xdf2   :  { %3232 = vmatprep.subr.bf16.mxu0 %v3401_v0 }
 0xdf5   :  { %3234 = vmatpush3.bf16.msra.mxu0 %v3500_v32 }
 0xdf6   :  { %3235 = vmatprep.subr.bf16.mxu0 %v3401_v0 }
 0xdf9   :  { %3237 = vmatpush3.bf16.msra.mxu0 %v3510_v35 }
 0xdfa   :  { %3238 = vmatprep.subr.bf16.mxu0 %v3401_v0 }
 0xdfd   :  { %3240 = vmatpush3.bf16.msra.mxu0 %v3521_v39 }
 0xdfe   :  { %3253 = vmatprep.subr.bf16.mxu0 %v3401_v0 }
 0xec3   :  { %v1151_v21 = vpop.f32.mrb[10].mxu0 }
 0xec4   :  { %v1152_v22 = vadd.f32 %v3545_v44, %v1151_v21  ;;  %v2929_v23 = vpop.f32.mrb[11].mxu0 }
 0xec5   :  { %v1458_v23 = vld [vmem:[%s4000_s2 + $0x80] sm:$0xff] }
 0xec6   :  { %3364 = vtanh.f32 %v1152_v22 }
 0xed0   :  { %v3365_v24 = vpop.eup %3364 }
 0xed1   :  { %1160 = vrot.lane.b32.xlu1 %v3365_v24, %s3404_s27  ;;  %v1156_v25 = vmul.f32 0.5, %v3365_v24  ;;  %v1459_v24 = vld [vmem:[%s4000_s2 + $0x88] sm:$0xff] }
 0xed3   :  { %v1157_v26 = vadd.f32 0.5, %v1156_v25  ;;  %v1460_v25 = vld [vmem:[%s4000_s2 + $0x90] sm:$0xff] }
 0xed5   :  { %v1158_v29 = vmul.f32 %v1157_v26, %v3653_v41  ;;  %v3221_v41 = vpack.c.bf16 %v1179_v40, %v1178_v37 }
 0xed7   :  { %3222 = vmatpush3.bf16.msra.mxu1 %v3221_v41 }
 0xed8   :  { %3223 = vmatprep.subr.bf16.mxu1 %v3401_v0 }
 0xf43   :  { %v1161_v27 = vpop.permute.xlu1 %1160 }
 0xf44   :  { %v1163_v28 = vmul.f32 %v1161_v27, %v1157_v26  ;;  %v1461_v27 = vld [vmem:[%s4000_s2 + $0x98] sm:$0xff] }
 0xf46   :  { %1165 = vrot.lane.b32.xlu0 %v1163_v28, %s3405_s28  ;;  %v3245_v28 = vpack.c.bf16 %v1461_v27, %v1460_v25 }
 0xfb8   :  { %v1166_v31 = vpop.permute.xlu0 %1165 }
 0xfb9   :  { %v3712_v33 = vadd.f32 %v1166_v31, %v1158_v29 }
 0xfbb   :  { %3366 = vtanh.f32 %v3712_v33 }
 0xfc5   :  { %v3367_v42 = vpop.eup %3366 }
 0xfc6   :  { %1171 = vrot.lane.b32.xlu1 %v3367_v42, %s3404_s27 }
 0xfca   :  { %1257 = vrot.lane.b32.xlu1 %v1256_v43, %s3405_s28 }
0x1038   :  { %v1172_v45 = vpop.permute.xlu1 %1171 }
0x1039   :  { %v1174_v46 = vmul.f32 %v1172_v45, %v1157_v26  ;;  %v3242_v26 = vpack.c.bf16 %v1459_v24, %v1458_v23 }
0x103b   :  { %v1175_v47 = vmax.f32 %v1174_v46, 0.0 }
0x103c   :  { %v1258_v49 = vpop.permute.xlu1 %1257 }
0x103d   :  { %1181 = vrot.lane.b32.xlu0 %v1175_v47, %s3405_s28 }
0x10af   :  { %v1182_v48 = vpop.permute.xlu0 %1181 }
0x10b0   :  { %2939 = vmatmul.mubr.msk.f32.vlgmr.msra.gmra.mrb[12].mxu1 %vm121_vm3, %v1182_v48 }
0x10b1   :  { %3225 = vmatpush3.bf16.msra.mxu1 %v3436_v4  ;;  %2949 = vmatprep.mubr.msk.f32.mxu1 %vm3402_vm2, %v3403_v8 }
0x10b2   :  { %3226 = vmatprep.subr.bf16.mxu1 %v3401_v0 }
0x10b5   :  { %3228 = vmatpush3.bf16.msra.mxu1 %v3457_v10 }
0x10b6   :  { %3241 = vmatprep.subr.bf16.mxu1 %v3401_v0 }
0x10b8   :  { %2950 = vmatmul.mubr.msk.f32.vlgmr.msra.gmra.mrb[14].mxu1 %vm121_vm3, %v1258_v49 }
0x10b9   :  { %2979 = vmatprep.mubr.msk.f32.mxu1 %vm3402_vm2, %v3403_v8  ;;  %3243 = vmatpush3.bf16.msra.mxu1 %v3242_v26 }
0x10ba   :  { %3244 = vmatprep.subr.bf16.mxu1 %v3401_v0 }
0x10bd   :  { %3246 = vmatpush3.bf16.msra.mxu1 %v3245_v28 }
0x10be   :  { %3247 = vmatprep.subr.bf16.mxu1 %v3401_v0 }
0x1183   :  { %v1251_v50 = vpop.f32.mrb[12].mxu1 }
0x1184   :  { %v3743_v51 = vadd.f32 %v1251_v50, %v3684_v58  ;;  %v2940_v53 = vpop.f32.mrb[13].mxu1 }
0x118b   :  { %v1327_v54 = vpop.f32.mrb[14].mxu1 }
0x118c   :  { %v1331_v55 = vadd.f32 %v1327_v54, %v3475_v13  ;;  %v2951_v56 = vpop.f32.mrb[15].mxu1 }
0x118e   :  { %3368 = vtanh.f32 %v1331_v55 }
0x1198   :  { %v3369_v57 = vpop.eup %3368 }
0x1199   :  { %1340 = vrot.lane.b32.xlu0 %v3369_v57, %s3404_s27  ;;  %v1333_v59 = vmul.f32 0.5, %v3369_v57 }
0x119b   :  { %v1334_v60 = vadd.f32 0.5, %v1333_v59 }
0x119d   :  { %v1338_v1 = vmul.f32 %v1336_v63, %v1334_v60 }
0x120b   :  { %v1341_v61 = vpop.permute.xlu0 %1340 }
0x120c   :  { %v1343_v62 = vmul.f32 %v1341_v61, %v1334_v60 }
0x120e   :  { %1345 = vrot.lane.b32.xlu1 %v1343_v62, %s3405_s28 }
0x1280   :  { %v1346_v58 = vpop.permute.xlu1 %1345 }
0x1281   :  { %v3749_v2 = vadd.f32 %v1346_v58, %v1338_v1 }
0x1283   :  { %3370 = vtanh.f32 %v3749_v2  ;;  %v1618_v53 = vrot.slane %v3749_v2, 6 }
0x128d   :  { %v3371_v3 = vpop.eup %3370 }
0x128e   :  { %1351 = vrot.lane.b32.xlu0 %v3371_v3, %s3404_s27 }
0x1292   :  { %1360 = vrot.lane.b32.xlu0 %v1174_v46, %s3404_s27 }
0x1300   :  { %v1352_v5 = vpop.permute.xlu0 %1351 }
0x1301   :  { %v1354_v6 = vmul.f32 %v1352_v5, %v1334_v60 }
0x1303   :  { %1356 = vrot.lane.b32.xlu1 %v1354_v6, %s3405_s28 }
0x1304   :  { %v1361_v7 = vpop.permute.xlu0 %1360 }
0x1375   :  { %v1357_v9 = vpop.permute.xlu1 %1356 }
0x1376   :  { %v1363_v11 = vsel %vm121_vm3, %v1357_v9, %v1361_v7 }
0x1377   :  { %2969 = vmatmul.mubr.msk.f32.vlgmr.msra.gmra.mrb[12].mxu0 %vm225_vm4, %v1363_v11 }
0x1378   :  { %3255 = vmatpush3.bf16.msra.mxu0 %v3494_v30  ;;  %3009 = vmatprep.mubr.msk.f32.mxu0 %vm3402_vm2, %v3403_v8 }
0x1379   :  { %3256 = vmatprep.subr.bf16.mxu0 %v3401_v0 }
0x137c   :  { %3258 = vmatpush3.bf16.msra.mxu0 %v3500_v32 }
0x137d   :  { %3259 = vmatprep.subr.bf16.mxu0 %v3401_v0 }
0x1380   :  { %3261 = vmatpush3.bf16.msra.mxu0 %v3510_v35 }
0x1381   :  { %3262 = vmatprep.subr.bf16.mxu0 %v3401_v0 }
0x1384   :  { %3264 = vmatpush3.bf16.msra.mxu0 %v3521_v39 }
0x1385   :  { %3277 = vmatprep.subr.bf16.mxu0 %v3401_v0 }
0x144a   :  { %v1433_v12 = vpop.f32.mrb[12].mxu0 }
0x144b   :  { %v1434_v14 = vadd.f32 %v3545_v44, %v1433_v12  ;;  %v2970_v15 = vpop.f32.mrb[13].mxu0 }
0x144d   :  { %3372 = vtanh.f32 %v1434_v14 }
0x1457   :  { %v3373_v16 = vpop.eup %3372 }
0x1458   :  { %1442 = vrot.lane.b32.xlu1 %v3373_v16, %s3404_s27  ;;  %v1438_v17 = vmul.f32 0.5, %v3373_v16  ;;  %v1742_v16 = vld [vmem:[%s4000_s2 + $0xa0] sm:$0xff] }
0x145a   :  { %v1439_v18 = vadd.f32 0.5, %v1438_v17  ;;  %v1743_v17 = vld [vmem:[%s4000_s2 + $0xa8] sm:$0xff] }
0x145c   :  { %v1440_v20 = vmul.f32 %v1439_v18, %v3712_v33 }
0x14ca   :  { %v1443_v19 = vpop.permute.xlu1 %1442 }
0x14cb   :  { %v1445_v52 = vmul.f32 %v1443_v19, %v1439_v18  ;;  %v3266_v19 = vpack.c.bf16 %v1743_v17, %v1742_v16 }
0x14cd   :  { %1447 = vrot.lane.b32.xlu0 %v1445_v52, %s3405_s28  ;;  %v1745_v52 = vld [vmem:[%s4000_s2 + $0xb8] sm:$0xff] }
0x153f   :  { %v1448_v21 = vpop.permute.xlu0 %1447 }
0x1540   :  { %v3771_v22 = vadd.f32 %v1448_v21, %v1440_v20 }
0x1542   :  { %3374 = vtanh.f32 %v3771_v22 }
0x154c   :  { %v3375_v29 = vpop.eup %3374 }
0x154d   :  { %1453 = vrot.lane.b32.xlu1 %v3375_v29, %s3404_s27 }
0x15bf   :  { %v1454_v31 = vpop.permute.xlu1 %1453 }
0x15c0   :  { %v1456_v33 = vmul.f32 %v1454_v31, %v1439_v18  ;;  %v1744_v18 = vld [vmem:[%s4000_s2 + $0xb0] sm:$0xff] }
0x15c1   :  { %v3269_v20 = vpack.c.bf16 %v1745_v52, %v1744_v18 }
0x15c2   :  { %v1457_v34 = vmax.f32 %v1456_v33, 0.0  ;;  %v1642_v57 = vrot.slane %v1456_v33, 6 }
0x15c4   :  { %1463 = vrot.lane.b32.xlu0 %v1457_v34, %s3405_s28 }
0x1636   :  { %v1464_v36 = vpop.permute.xlu0 %1463 }
0x1637   :  { %2980 = vmatmul.mubr.msk.f32.vlgmr.msra.gmra.mrb[16].mxu1 %vm121_vm3, %v1464_v36 }
0x1638   :  { %3249 = vmatpush3.bf16.msra.mxu1 %v3436_v4  ;;  %2990 = vmatprep.mubr.msk.f32.mxu1 %vm3402_vm2, %v3403_v8 }
0x1639   :  { %3250 = vmatprep.subr.bf16.mxu1 %v3401_v0 }
0x163c   :  { %3252 = vmatpush3.bf16.msra.mxu1 %v3457_v10 }
0x163d   :  { %3265 = vmatprep.subr.bf16.mxu1 %v3401_v0 }
0x163f   :  { %2991 = vmatmul.mubr.msk.f32.vlgmr.msra.gmra.mrb[18].mxu1 %vm121_vm3, %v1357_v9 }
0x1640   :  { %3020 = vmatprep.mubr.msk.f32.mxu1 %vm3402_vm2, %v3403_v8  ;;  %3267 = vmatpush3.bf16.msra.mxu1 %v3266_v19 }
0x1641   :  { %3268 = vmatprep.subr.bf16.mxu1 %v3401_v0 }
0x1644   :  { %3270 = vmatpush3.bf16.msra.mxu1 %v3269_v20 }
0x1645   :  { %3271 = vmatprep.subr.bf16.mxu1 %v3401_v0 }
0x170a   :  { %v1533_v37 = vpop.f32.mrb[16].mxu1 }
0x170b   :  { %v3801_v38 = vadd.f32 %v1533_v37, %v3743_v51  ;;  %v2981_v40 = vpop.f32.mrb[17].mxu1 }
0x1712   :  { %v1606_v41 = vpop.f32.mrb[18].mxu1 }
0x1713   :  { %v1611_v42 = vrot.slane %v1606_v41, 6  ;;  %v2992_v43 = vpop.f32.mrb[19].mxu1 }
0x1715   :  { %v1613_v45 = vadd.f32 %v1611_v42, %v3475_v13 }
0x1717   :  { %3376 = vtanh.f32 %v1613_v45 }
0x1721   :  { %v3377_v46 = vpop.eup %3376 }
0x1722   :  { %1622 = vrot.lane.b32.xlu1 %v3377_v46, %s3404_s27  ;;  %v1615_v47 = vmul.f32 0.5, %v3377_v46 }
0x1724   :  { %v1616_v48 = vadd.f32 0.5, %v1615_v47 }
0x1726   :  { %v1620_v51 = vmul.f32 %v1618_v53, %v1616_v48 }
0x1794   :  { %v1623_v49 = vpop.permute.xlu1 %1622 }
0x1795   :  { %v1625_v50 = vmul.f32 %v1623_v49, %v1616_v48 }
0x1797   :  { %1627 = vrot.lane.b32.xlu0 %v1625_v50, %s3405_s28 }
0x1809   :  { %v1628_v54 = vpop.permute.xlu0 %1627 }
0x180a   :  { %v3807_v55 = vadd.f32 %v1628_v54, %v1620_v51 }
0x180c   :  { %3378 = vtanh.f32 %v3807_v55  ;;  %v1905_v46 = vrot.slane %v3807_v55, 6 }
0x1816   :  { %v3379_v56 = vpop.eup %3378 }
0x1817   :  { %1633 = vrot.lane.b32.xlu1 %v3379_v56, %s3404_s27 }
0x181b   :  { %1643 = vrot.lane.b32.xlu1 %v1642_v57, %s3404_s27 }
0x1889   :  { %v1634_v59 = vpop.permute.xlu1 %1633 }
0x188a   :  { %v1636_v60 = vmul.f32 %v1634_v59, %v1616_v48 }
0x188c   :  { %1638 = vrot.lane.b32.xlu0 %v1636_v60, %s3405_s28 }
0x188d   :  { %v1644_v61 = vpop.permute.xlu1 %1643 }
0x18fe   :  { %v1639_v62 = vpop.permute.xlu0 %1638 }
0x18ff   :  { %v1646_v63 = vsel %vm121_vm3, %v1639_v62, %v1644_v61 }
0x1900   :  { %v1648_v1 = vrot.slane %v1646_v63, 2 }
0x1902   :  { %3010 = vmatmul.mubr.msk.f32.vlgmr.msra.gmra.mrb[14].mxu0 %vm225_vm4, %v1648_v1 }
0x1903   :  { %3279 = vmatpush3.bf16.msra.mxu0 %v3494_v30  ;;  %3050 = vmatprep.mubr.msk.f32.mxu0 %vm3402_vm2, %v3403_v8 }
0x1904   :  { %3280 = vmatprep.subr.bf16.mxu0 %v3401_v0 }
0x1907   :  { %3282 = vmatpush3.bf16.msra.mxu0 %v3500_v32 }
0x1908   :  { %3283 = vmatprep.subr.bf16.mxu0 %v3401_v0 }
0x190b   :  { %3285 = vmatpush3.bf16.msra.mxu0 %v3510_v35 }
0x190c   :  { %3286 = vmatprep.subr.bf16.mxu0 %v3401_v0 }
0x190f   :  { %3288 = vmatpush3.bf16.msra.mxu0 %v3521_v39 }
0x1910   :  { %3301 = vmatprep.subr.bf16.mxu0 %v3401_v0 }
0x19d5   :  { %v1717_v58 = vpop.f32.mrb[14].mxu0 }
0x19d6   :  { %v1718_v2 = vadd.f32 %v3545_v44, %v1717_v58  ;;  %v3011_v3 = vpop.f32.mrb[15].mxu0 }
0x19d7   :  { %v2031_v3 = vld [vmem:[%s4000_s2 + $0xd0] sm:$0xff] }
0x19d8   :  { %3380 = vtanh.f32 %v1718_v2  ;;  %v2030_v2 = vld [vmem:[%s4000_s2 + $0xc8] sm:$0xff] }
0x19e2   :  { %v3381_v5 = vpop.eup %3380 }
0x19e3   :  { %1726 = vrot.lane.b32.xlu0 %v3381_v5, %s3404_s27  ;;  %v1722_v6 = vmul.f32 0.5, %v3381_v5 }
0x19e5   :  { %v1723_v7 = vadd.f32 0.5, %v1722_v6  ;;  %v2032_v6 = vld [vmem:[%s4000_s2 + $0xd8] sm:$0xff] }
0x19e7   :  { %v1724_v12 = vmul.f32 %v1723_v7, %v3771_v22  ;;  %v1822_v22 = vrot.slane %v1636_v60, 2 }
0x1a55   :  { %v1727_v9 = vpop.permute.xlu0 %1726 }
0x1a56   :  { %v1729_v11 = vmul.f32 %v1727_v9, %v1723_v7 }
0x1a58   :  { %1731 = vrot.lane.b32.xlu1 %v1729_v11, %s3405_s28 }
0x1aca   :  { %v1732_v14 = vpop.permute.xlu1 %1731 }
0x1acb   :  { %v3829_v15 = vadd.f32 %v1732_v14, %v1724_v12 }
0x1acd   :  { %3382 = vtanh.f32 %v3829_v15 }
0x1ad7   :  { %v3383_v21 = vpop.eup %3382 }
0x1ad8   :  { %1737 = vrot.lane.b32.xlu0 %v3383_v21, %s3404_s27 }
0x1adc   :  { %1823 = vrot.lane.b32.xlu0 %v1822_v22, %s3405_s28 }
0x1b4a   :  { %v1738_v23 = vpop.permute.xlu0 %1737 }
0x1b4b   :  { %v1740_v24 = vmul.f32 %v1738_v23, %v1723_v7  ;;  %v3293_v7 = vpack.c.bf16 %v2032_v6, %v2031_v3  ;;  %v2488_v6 = vld [vmem:[%s4000_s2 + $0x128] sm:$0xff] }
0x1b4d   :  { %v1741_v25 = vmax.f32 %v1740_v24, 0.0  ;;  %v1929_v50 = vrot.slane %v1740_v24, 4 }
0x1b4e   :  { %v1824_v27 = vpop.permute.xlu0 %1823 }
0x1b4f   :  { %1747 = vrot.lane.b32.xlu1 %v1741_v25, %s3405_s28 }
0x1bc1   :  { %v1748_v26 = vpop.permute.xlu1 %1747 }
0x1bc2   :  { %3021 = vmatmul.mubr.msk.f32.vlgmr.msra.gmra.mrb[20].mxu1 %vm121_vm3, %v1748_v26 }
0x1bc3   :  { %3273 = vmatpush3.bf16.msra.mxu1 %v3436_v4  ;;  %3031 = vmatprep.mubr.msk.f32.mxu1 %vm3402_vm2, %v3403_v8 }
0x1bc4   :  { %3274 = vmatprep.subr.bf16.mxu1 %v3401_v0 }
0x1bc7   :  { %3276 = vmatpush3.bf16.msra.mxu1 %v3457_v10 }
0x1bc8   :  { %3289 = vmatprep.subr.bf16.mxu1 %v3401_v0 }
0x1bca   :  { %3032 = vmatmul.mubr.msk.f32.vlgmr.msra.gmra.mrb[22].mxu1 %vm121_vm3, %v1824_v27 }
0x1bcb   :  { %3061 = vmatprep.mubr.msk.f32.mxu1 %vm3402_vm2, %v3403_v8 }
0x1c95   :  { %v1817_v28 = vpop.f32.mrb[20].mxu1 }
0x1c96   :  { %v3860_v29 = vadd.f32 %v1817_v28, %v3801_v38  ;;  %v3022_v31 = vpop.f32.mrb[21].mxu1 }
0x1c9d   :  { %v1893_v33 = vpop.f32.mrb[22].mxu1 }
0x1c9e   :  { %v1898_v34 = vrot.slane %v1893_v33, 4  ;;  %v3033_v36 = vpop.f32.mrb[23].mxu1 }
0x1ca0   :  { %v1900_v37 = vadd.f32 %v1898_v34, %v3475_v13 }
0x1ca2   :  { %3384 = vtanh.f32 %v1900_v37 }
0x1cac   :  { %v3385_v40 = vpop.eup %3384 }
0x1cad   :  { %1909 = vrot.lane.b32.xlu1 %v3385_v40, %s3404_s27  ;;  %v1902_v41 = vmul.f32 0.5, %v3385_v40 }
0x1caf   :  { %v1903_v42 = vadd.f32 0.5, %v1902_v41 }
0x1cb1   :  { %v1907_v38 = vmul.f32 %v1905_v46, %v1903_v42 }
0x1d1f   :  { %v1910_v43 = vpop.permute.xlu1 %1909 }
0x1d20   :  { %v1912_v45 = vmul.f32 %v1910_v43, %v1903_v42 }
0x1d22   :  { %1914 = vrot.lane.b32.xlu0 %v1912_v45, %s3405_s28  ;;  %v3400_v45 = vld [vmem:[%s3998_s1 + $0x65] ss:$0 sm:$0xff] }
0x1d94   :  { %v1915_v47 = vpop.permute.xlu0 %1914 }
0x1d95   :  { %v3866_v48 = vadd.f32 %v1915_v47, %v1907_v38 }
0x1d97   :  { %3386 = vtanh.f32 %v3866_v48  ;;  %v2192_v27 = vrot.slane %v3866_v48, 6 }
0x1da1   :  { %v3387_v49 = vpop.eup %3386 }
0x1da2   :  { %1920 = vrot.lane.b32.xlu1 %v3387_v49, %s3404_s27 }
0x1da6   :  { %1930 = vrot.lane.b32.xlu1 %v1929_v50, %s3404_s27 }
0x1e14   :  { %v1921_v53 = vpop.permute.xlu1 %1920 }
0x1e15   :  { %v1923_v51 = vmul.f32 %v1921_v53, %v1903_v42 }
0x1e17   :  { %1925 = vrot.lane.b32.xlu0 %v1923_v51, %s3405_s28  ;;  %v2109_v11 = vrot.slane %v1923_v51, 4 }
0x1e18   :  { %v1931_v54 = vpop.permute.xlu1 %1930 }
0x1e89   :  { %v1926_v56 = vpop.permute.xlu0 %1925 }
0x1e8a   :  { %v1933_v55 = vsel %vm121_vm3, %v1926_v56, %v1931_v54 }
0x1e8b   :  { %v1935_v57 = vrot.slane %v1933_v55, 4  ;;  %v2316_v55 = vld [vmem:[%s4000_s2 + $0xe0] sm:$0xff] }
0x1e8d   :  { %3051 = vmatmul.mubr.msk.f32.vlgmr.msra.gmra.mrb[16].mxu0 %vm225_vm4, %v1935_v57  ;;  %v2317_v57 = vld [vmem:[%s4000_s2 + $0xe8] sm:$0xff] }
0x1e8e   :  { %3303 = vmatpush3.bf16.msra.mxu0 %v3494_v30  ;;  %3091 = vmatprep.mubr.msk.f32.mxu0 %vm3402_vm2, %v3403_v8 }
0x1e8f   :  { %3304 = vmatprep.subr.bf16.mxu0 %v3401_v0 }
0x1e92   :  { %3306 = vmatpush3.bf16.msra.mxu0 %v3500_v32 }
0x1e93   :  { %3307 = vmatprep.subr.bf16.mxu0 %v3401_v0 }
0x1e96   :  { %3309 = vmatpush3.bf16.msra.mxu0 %v3510_v35 }
0x1e97   :  { %3310 = vmatprep.subr.bf16.mxu0 %v3401_v0 }
0x1e9a   :  { %3312 = vmatpush3.bf16.msra.mxu0 %v3521_v39 }
0x1e9b   :  { %3325 = vmatprep.subr.bf16.mxu0 %v3401_v0 }
0x1f60   :  { %v2004_v59 = vpop.f32.mrb[16].mxu0 }
0x1f61   :  { %v2005_v30 = vadd.f32 %v3545_v44, %v2004_v59  ;;  %v3052_v60 = vpop.f32.mrb[17].mxu0  ;;  %v2029_v44 = vld [vmem:[%s4000_s2 + $0xc0] sm:$0xff]  ;;  %v2318_v59 = vld [vmem:[%s4000_s2 + $0xf0] sm:$0xff] }
0x1f62   :  { %v3290_v5 = vpack.c.bf16 %v2030_v2, %v2029_v44  ;;  %v2319_v60 = vld [vmem:[%s4000_s2 + $0xf8] sm:$0xff]  ;;  %v2407_v2 = vld [vmem:[%s4000_s2 + $0x110] sm:$0xff] }
0x1f63   :  { %3388 = vtanh.f32 %v2005_v30  ;;  %v3314_v30 = vpack.c.bf16 %v2317_v57, %v2316_v55 }
0x1f64   :  { %3291 = vmatpush3.bf16.msra.mxu1 %v3290_v5  ;;  %v2487_v5 = vld [vmem:[%s4000_s2 + $0x120] sm:$0xff] }
0x1f65   :  { %3292 = vmatprep.subr.bf16.mxu1 %v3401_v0 }
0x1f68   :  { %3294 = vmatpush3.bf16.msra.mxu1 %v3293_v7  ;;  %v3326_v7 = vpack.c.bf16 %v2488_v6, %v2487_v5 }
0x1f69   :  { %3295 = vmatprep.subr.bf16.mxu1 %v3401_v0 }
0x1f6d   :  { %v3389_v61 = vpop.eup %3388 }
0x1f6e   :  { %2013 = vrot.lane.b32.xlu0 %v3389_v61, %s3404_s27  ;;  %v2009_v62 = vmul.f32 0.5, %v3389_v61  ;;  %v3317_v61 = vpack.c.bf16 %v2319_v60, %v2318_v59 }
0x1f70   :  { %v2010_v32 = vadd.f32 0.5, %v2009_v62 }
0x1f72   :  { %v2011_v35 = vmul.f32 %v2010_v32, %v3829_v15 }
0x1fe0   :  { %v2014_v63 = vpop.permute.xlu0 %2013 }
0x1fe1   :  { %v2016_v1 = vmul.f32 %v2014_v63, %v2010_v32 }
0x1fe3   :  { %2018 = vrot.lane.b32.xlu1 %v2016_v1, %s3405_s28 }
0x2055   :  { %v2019_v58 = vpop.permute.xlu1 %2018 }
0x2056   :  { %v3888_v39 = vadd.f32 %v2019_v58, %v2011_v35  ;;  %v2405_v58 = vld [vmem:[%s4000_s2 + $0x100] sm:$0xff] }
0x2058   :  { %3390 = vtanh.f32 %v3888_v39 }
0x2062   :  { %v3391_v9 = vpop.eup %3390 }
0x2063   :  { %2024 = vrot.lane.b32.xlu0 %v3391_v9, %s3404_s27 }
0x2067   :  { %2110 = vrot.lane.b32.xlu0 %v2109_v11, %s3405_s28  ;;  %v2602_v11 = vld [vmem:[%s4000_s2 + $0x140] ss:$0 sm:$0xff] }
0x20d5   :  { %v2025_v12 = vpop.permute.xlu0 %2024 }
0x20d6   :  { %v2027_v14 = vmul.f32 %v2025_v12, %v2010_v32 }
0x20d8   :  { %v2028_v15 = vmax.f32 %v2027_v14, 0.0 }
0x20d9   :  { %v2111_v17 = vpop.permute.xlu0 %2110 }
0x20da   :  { %2034 = vrot.lane.b32.xlu1 %v2028_v15, %s3405_s28 }
0x214c   :  { %v2035_v16 = vpop.permute.xlu1 %2034 }
0x214d   :  { %3062 = vmatmul.mubr.msk.f32.vlgmr.msra.gmra.mrb[24].mxu1 %vm121_vm3, %v2035_v16 }
0x214e   :  { %3297 = vmatpush3.bf16.msra.mxu1 %v3436_v4  ;;  %3072 = vmatprep.mubr.msk.f32.mxu1 %vm3402_vm2, %v3403_v8 }
0x214f   :  { %3298 = vmatprep.subr.bf16.mxu1 %v3401_v0 }
0x2152   :  { %3300 = vmatpush3.bf16.msra.mxu1 %v3457_v10 }
0x2153   :  { %3313 = vmatprep.subr.bf16.mxu1 %v3401_v0 }
0x2155   :  { %3073 = vmatmul.mubr.msk.f32.vlgmr.msra.gmra.mrb[26].mxu1 %vm121_vm3, %v2111_v17  ;;  %v2489_v17 = vld [vmem:[%s4000_s2 + $0x130] sm:$0xff] }
0x2156   :  { %3102 = vmatprep.mubr.msk.f32.mxu1 %vm3402_vm2, %v3403_v8  ;;  %3315 = vmatpush3.bf16.msra.mxu1 %v3314_v30 }
0x2157   :  { %3316 = vmatprep.subr.bf16.mxu1 %v3401_v0 }
0x215a   :  { %3318 = vmatpush3.bf16.msra.mxu1 %v3317_v61 }
0x215b   :  { %3319 = vmatprep.subr.bf16.mxu1 %v3401_v0 }
0x2220   :  { %v2104_v18 = vpop.f32.mrb[24].mxu1 }
0x2221   :  { %v3919_v19 = vadd.f32 %v2104_v18, %v3860_v29  ;;  %v3063_v4 = vpop.f32.mrb[25].mxu1 }
0x2222   :  { %v2603_v4 = vld [vmem:[%s4000_s2 + $0x141] ss:$0 sm:$0xff] }
0x2228   :  { %v2180_v52 = vpop.f32.mrb[26].mxu1 }
0x2229   :  { %v2185_v20 = vrot.slane %v2180_v52, 2  ;;  %v3074_v21 = vpop.f32.mrb[27].mxu1 }
0x222b   :  { %v2187_v22 = vadd.f32 %v2185_v20, %v3475_v13  ;;  %v2216_v13 = vrot.slane %v2027_v14, 2 }
0x222d   :  { %3392 = vtanh.f32 %v2187_v22  ;;  %v2605_v22 = vld [vmem:[%s4000_s2 + $0x142] ss:$0 sm:$0xff] }
0x2237   :  { %v3393_v10 = vpop.eup %3392 }
0x2238   :  { %2196 = vrot.lane.b32.xlu1 %v3393_v10, %s3404_s27  ;;  %v2189_v23 = vmul.f32 0.5, %v3393_v10 }
0x223a   :  { %v2190_v24 = vadd.f32 0.5, %v2189_v23 }
0x223c   :  { %v2194_v28 = vmul.f32 %v2192_v27, %v2190_v24 }
0x22aa   :  { %v2197_v25 = vpop.permute.xlu1 %2196 }
0x22ab   :  { %v2199_v26 = vmul.f32 %v2197_v25, %v2190_v24 }
0x22ad   :  { %2201 = vrot.lane.b32.xlu0 %v2199_v26, %s3405_s28 }
0x231f   :  { %v2202_v29 = vpop.permute.xlu0 %2201 }
0x2320   :  { %v2204_v31 = vadd.f32 %v2202_v29, %v2194_v28 }
0x2322   :  { %3394 = vtanh.f32 %v2204_v31 }
0x232c   :  { %v3395_v33 = vpop.eup %3394 }
0x232d   :  { %2207 = vrot.lane.b32.xlu1 %v3395_v33, %s3404_s27 }
0x2331   :  { %2217 = vrot.lane.b32.xlu1 %v2216_v13, %s3404_s27 }
0x239f   :  { %v2208_v34 = vpop.permute.xlu1 %2207 }
0x23a0   :  { %v2210_v36 = vmul.f32 %v2208_v34, %v2190_v24 }
0x23a2   :  { %2212 = vrot.lane.b32.xlu0 %v2210_v36, %s3405_s28 }
0x23a3   :  { %v2218_v37 = vpop.permute.xlu1 %2217 }
0x2414   :  { %v2213_v40 = vpop.permute.xlu0 %2212 }
0x2415   :  { %v2220_v41 = vsel %vm121_vm3, %v2213_v40, %v2218_v37 }
0x2416   :  { %v2222_v42 = vrot.slane %v2220_v41, 6 }
0x2418   :  { %3092 = vmatmul.mubr.msk.f32.vlgmr.msra.gmra.mrb[18].mxu0 %vm225_vm4, %v2222_v42 }
0x2419   :  { %3124 = vmatprep.mubr.msk.f32.mxu0 %vm3402_vm2, %v3403_v8  ;;  %3327 = vmatpush3.bf16.msra.mxu0 %v3326_v7 }
0x241a   :  { %3328 = vmatprep.subr.bf16.mxu0 %v3401_v0 }
0x24eb   :  { %v2291_v43 = vpop.f32.mrb[18].mxu0 }
0x24ec   :  { %v2292_v46 = vadd.f32 %v3400_v45, %v2291_v43  ;;  %v3093_v38 = vpop.f32.mrb[19].mxu0 }
0x24ee   :  { %3396 = vtanh.f32 %v2292_v46 }
0x24f8   :  { %v3397_v47 = vpop.eup %3396 }
0x24f9   :  { %2300 = vrot.lane.b32.xlu0 %v3397_v47, %s3404_s27  ;;  %v2296_v48 = vmul.f32 0.5, %v3397_v47 }
0x24fb   :  { %v2297_v49 = vadd.f32 0.5, %v2296_v48 }
0x24fd   :  { %v2298_v51 = vmul.f32 %v2297_v49, %v3888_v39  ;;  %v2406_v39 = vld [vmem:[%s4000_s2 + $0x108] sm:$0xff] }
0x24fe   :  { %v3320_v44 = vpack.c.bf16 %v2406_v39, %v2405_v58 }
0x256b   :  { %v2301_v50 = vpop.permute.xlu0 %2300 }
0x256c   :  { %v2303_v53 = vmul.f32 %v2301_v50, %v2297_v49 }
0x256e   :  { %2305 = vrot.lane.b32.xlu1 %v2303_v53, %s3405_s28 }
0x25e0   :  { %v2306_v54 = vpop.permute.xlu1 %2305 }
0x25e1   :  { %v2308_v56 = vadd.f32 %v2306_v54, %v2298_v51 }
0x25e3   :  { %3398 = vtanh.f32 %v2308_v56 }
0x25ed   :  { %v3399_v62 = vpop.eup %3398 }
0x25ee   :  { %2311 = vrot.lane.b32.xlu0 %v3399_v62, %s3404_s27 }
0x2660   :  { %v2312_v32 = vpop.permute.xlu0 %2311 }
0x2661   :  { %v2314_v63 = vmul.f32 %v2312_v32, %v2297_v49 }
0x2663   :  { %v2315_v1 = vmax.f32 %v2314_v63, 0.0 }
0x2665   :  { %2321 = vrot.lane.b32.xlu1 %v2315_v1, %s3405_s28 }
0x26d7   :  { %v2322_v35 = vpop.permute.xlu1 %2321 }
0x26d8   :  { %3103 = vmatmul.mubr.msk.f32.vlgmr.msra.gmra.mrb[28].mxu1 %vm121_vm3, %v2322_v35 }
0x26d9   :  { %3113 = vmatprep.mubr.msk.f32.mxu1 %vm3402_vm2, %v3403_v8  ;;  %3321 = vmatpush3.bf16.msra.mxu1 %v3320_v44  ;;  %v2408_v8 = vld [vmem:[%s4000_s2 + $0x118] sm:$0xff] }
0x26da   :  { %3322 = vmatprep.subr.bf16.mxu1 %v3401_v0  ;;  %v3323_v3 = vpack.c.bf16 %v2408_v8, %v2407_v2  ;;  %v2490_v0 = vld [vmem:[%s4000_s2 + $0x138] sm:$0xff] }
0x26db   :  { %v3329_v18 = vpack.c.bf16 %v2490_v0, %v2489_v17 }
0x26dd   :  { %3324 = vmatpush3.bf16.msra.mxu1 %v3323_v3  ;;  %3330 = vmatpush3.bf16.msra.mxu0 %v3329_v18 }
0x27ab   :  { %v2391_v9 = vpop.f32.mrb[28].mxu1 }
0x27ac   :  { %v2395_v12 = vadd.f32 %v2391_v9, %v3919_v19  ;;  %v3104_v14 = vpop.f32.mrb[29].mxu1 }
0x27ae   :  { %v2403_v15 = vadd.f32 %v2602_v11, %v2395_v12 }
0x27b0   :  { %v2404_v16 = vmax.f32 %v2403_v15, 0.0 }
0x27b2   :  { %3114 = vmatmul.mubr.msk.f32.vlgmr.msra.gmra.mrb[30].mxu1 %vm121_vm3, %v2404_v16 }
0x2885   :  { %v2482_v19 = vpop.f32.mrb[30].mxu1 }
0x2886   :  { %v2483_v52 = vadd.f32 %v2603_v4, %v2482_v19  ;;  %v3115_v20 = vpop.f32.mrb[31].mxu1 }
0x2888   :  { %v2486_v21 = vmax.f32 %v2483_v52, 0.0 }
0x288a   :  { %3125 = vmatmul.mubr.msk.f32.vlgmr.msra.gmra.mrb[20].mxu0 %vm121_vm3, %v2486_v21 }
0x295d   :  { %v2564_v10 = vpop.f32.mrb[20].mxu0 }
0x295e   :  { %v2565_v23 = vadd.f32 %v2605_v22, %v2564_v10  ;;  %v3126_v24 = vpop.f32.mrb[21].mxu0 }
0x2960   :  { %2569 = vst.msk [vmem:[%s4001_s3] sm:$0x3] %vm2568_vm5, %v2565_v23 }

</bundles_post_ra>
